<compile_context>
chip_gen: v5e
topology: v5e:2x2
jax: 0.10.0
libtpu: 0.0.40
codegen_flags: <defaults>
</compile_context>

<pallas_src>
import functools

import jax
import jax.numpy as jnp
from jax.experimental import pallas as pl
from jax.experimental.pallas import tpu as pltpu


def _choose_chunk(T, B):
    """Pick a time-chunk length: amortizes per-grid-step overhead, divides T, and keeps
    the flattened (TT*B) sublane dim 8-aligned (or equal to the full extent)."""
    if T * B <= 4096:            # whole sequence fits VMEM trivially -> single grid step
        return T
    for tt in (512, 256, 128, 64, 32, 16, 8):
        if T % tt == 0 and (tt * B) % 8 == 0:
            return tt
    return T


def _stacked_lstm_kernel(*refs, num_layers, batch, hid_dim, chunk, unroll):
    """One time-chunk of the whole LSTM stack.

    refs = (x2_ref, [wih_t, whh_t, bias] * num_layers, out2_ref,
            pre_scr, act_scr, h_scr, c_scr)

    x2_ref:  (TT*B, E)   bf16   time-flattened input chunk
    out2_ref:(TT*B, H)   f32    time-flattened output chunk (last layer's h)
    pre_scr: (TT*B, 4H)  f32    hoisted input projection for the current layer
    act_scr: (TT*B, H)   bf16   inter-layer activations within the chunk
    h_scr:   (L, B, H)   f32    per-layer h state carried across chunks
    c_scr:   (L, B, H)   f32    per-layer c state carried across chunks
    """
    nw = 3 * num_layers
    x_ref = refs[0]
    w_refs = refs[1:1 + nw]
    out_ref = refs[1 + nw]
    pre_scr, act_scr, h_scr, c_scr = refs[2 + nw:]

    B, H, TT = batch, hid_dim, chunk

    # Zero initial state (BasicUnit.init_hidden -> hidden_state=None).
    @pl.when(pl.program_id(0) == 0)
    def _():
        h_scr[...] = jnp.zeros_like(h_scr)
        c_scr[...] = jnp.zeros_like(c_scr)

    for l in range(num_layers):
        wih = w_refs[3 * l][...]        # (in_dim, 4H) bf16, resident
        whh = w_refs[3 * l + 1][...]    # (H, 4H)      bf16, resident
        bias = w_refs[3 * l + 2][...]   # (1, 4H)      f32,  b_ih + b_hh folded once

        # ---- Hoisted input projection: one big MXU GEMM over the whole chunk. ----
        inp = x_ref[...] if l == 0 else act_scr[...]          # already bf16
        pre_scr[...] = jnp.dot(inp, wih, preferred_element_type=jnp.float32) + bias

        last = l == num_layers - 1
        dst = out_ref if last else act_scr
        dst_dtype = jnp.float32 if last else jnp.bfloat16

        # ---- Serial recurrence over the chunk: only pre[t] + h @ W_hh^T per step. ----
        def step(t, carry, *, whh=whh, dst=dst, dst_dtype=dst_dtype):
            h_prev, c_prev = carry                             # f32 (B, H)
            row = pl.multiple_of(t * B, B)
            gates = pre_scr[pl.ds(row, B), :] + jnp.dot(
                h_prev.astype(jnp.bfloat16), whh, preferred_element_type=jnp.float32)
            # Gates permuted to [i, f, o, g] in the wrapper: sigmoid on one contiguous
            # 3H slab, tanh on the trailing H slab.
            sig = jax.nn.sigmoid(gates[:, :3 * H])
            i_g = sig[:, 0 * H:1 * H]
            f_g = sig[:, 1 * H:2 * H]
            o_g = sig[:, 2 * H:3 * H]
            g_g = jnp.tanh(gates[:, 3 * H:4 * H])
            c_new = f_g * c_prev + i_g * g_g
            h_new = o_g * jnp.tanh(c_new)
            dst[pl.ds(row, B), :] = h_new.astype(dst_dtype)
            return (h_new, c_new)

        h_fin, c_fin = jax.lax.fori_loop(0, TT, step, (h_scr[l], c_scr[l]),
                                         unroll=unroll)
        h_scr[l] = h_fin
        c_scr[l] = c_fin
        # droprate == 0.0 -> dropout between layers is the identity.
        # TODO(synk): training-mode dropout (droprate > 0) not implemented (p=0 here).


def _permute_gates(a, axis=0):
    """Reorder stacked LSTM gate blocks along `axis` from PyTorch [i, f, g, o]
    to kernel layout [i, f, o, g]."""
    i, f, g, o = jnp.split(a, 4, axis=axis)
    return jnp.concatenate([i, f, o, g], axis=axis)


def basic_rnn_forward(x, params, *, chunk=None):
    """BasicRNN.forward: sequentially apply each BasicUnit (LSTM, zero initial state).

    x:      (T, B, E) float32
    params: list of (w_ih (4H,in), w_hh (4H,H), b_ih (4H,), b_hh (4H,)) per layer.
    returns (T, B, H) float32
    """
    T, B, E = x.shape
    L = len(params)
    H = params[0][1].shape[1]

    # Pad batch up to a sublane multiple of 8 (free: partial vregs occupy 8 sublanes
    # anyway) so every dynamic row slice in the kernel is 8-aligned.
    Bp = max(8, ((B + 7) // 8) * 8)
    if Bp != B:
        x = jnp.pad(x, ((0, 0), (0, Bp - B), (0, 0)))

    TT = chunk if chunk is not None else _choose_chunk(T, Bp)
    assert T % TT == 0, "time chunk must divide T"
    num_chunks = T // TT
    unroll = TT <= 32          # unroll short fixed inner loops (LLO visibility)

    # Flatten (T, B, *) -> (T*B, *) so the hoisted projection is a plain 2-D MXU GEMM
    # and no in-kernel reshapes are needed. Cast x and weights to bf16 for the MXU.
    x2 = x.reshape(T * Bp, E).astype(jnp.bfloat16)

    weight_args = []
    in_specs = [pl.BlockSpec((TT * Bp, E), lambda c: (c, 0))]
    flops = 0
    transcendentals = 0
    bytes_accessed = x2.size * 2 + T * Bp * H * 4
    for (w_ih, w_hh, b_ih, b_hh) in params:
        in_dim = w_ih.shape[1]
        assert w_hh.shape == (4 * H, H)
        weight_args += [
            jnp.transpose(_permute_gates(w_ih)).astype(jnp.bfloat16),       # (in_dim, 4H)
            jnp.transpose(_permute_gates(w_hh)).astype(jnp.bfloat16),       # (H, 4H)
            _permute_gates(b_ih + b_hh).reshape(1, 4 * H).astype(jnp.float32),
        ]
        in_specs += [
            pl.BlockSpec((in_dim, 4 * H), lambda c: (0, 0)),   # resident weights
            pl.BlockSpec((H, 4 * H), lambda c: (0, 0)),
            pl.BlockSpec((1, 4 * H), lambda c: (0, 0)),
        ]
        flops += 2 * T * Bp * (in_dim + H) * 4 * H
        transcendentals += T * Bp * 6 * H
        bytes_accessed += (w_ih.size + w_hh.size) * 2 + 4 * H * 4

    kernel = functools.partial(
        _stacked_lstm_kernel,
        num_layers=L, batch=Bp, hid_dim=H, chunk=TT, unroll=unroll)

    out2 = pl.pallas_call(
        kernel,
        out_shape=jax.ShapeDtypeStruct((T * Bp, H), jnp.float32),
        grid_spec=pltpu.PrefetchScalarGridSpec(
            num_scalar_prefetch=0,
            grid=(num_chunks,),
            in_specs=in_specs,
            out_specs=pl.BlockSpec((TT * Bp, H), lambda c: (c, 0)),
            scratch_shapes=[
                pltpu.VMEM((TT * Bp, 4 * H), jnp.float32),   # hoisted gate pre-activations
                pltpu.VMEM((TT * Bp, H), jnp.bfloat16),      # inter-layer activations
                pltpu.VMEM((L, Bp, H), jnp.float32),         # h state per layer
                pltpu.VMEM((L, Bp, H), jnp.float32),         # c state per layer
            ],
        ),
        compiler_params=pltpu.CompilerParams(
            dimension_semantics=("arbitrary",),   # recurrence: chunks are sequential
        ),
        cost_estimate=pl.CostEstimate(
            flops=flops,
            transcendentals=transcendentals,
            bytes_accessed=bytes_accessed),
    )(x2, *weight_args)

    out = out2.reshape(T, Bp, H)
    return out[:, :B, :] if Bp != B else out


def init_basic_rnn_params(key, layer_num, emb_dim, hid_dim):
    """Deterministic PyTorch-style LSTM init: U(-1/sqrt(H), 1/sqrt(H)) for all params."""
    params = []
    bound = 1.0 / float(hid_dim) ** 0.5
    in_dim = emb_dim
    for _ in range(layer_num):
        key, k1, k2, k3, k4 = jax.random.split(key, 5)
        w_ih = jax.random.uniform(k1, (4 * hid_dim, in_dim), jnp.float32, -bound, bound)
        w_hh = jax.random.uniform(k2, (4 * hid_dim, hid_dim), jnp.float32, -bound, bound)
        b_ih = jax.random.uniform(k3, (4 * hid_dim,), jnp.float32, -bound, bound)
        b_hh = jax.random.uniform(k4, (4 * hid_dim,), jnp.float32, -bound, bound)
        params.append((w_ih, w_hh, b_ih, b_hh))
        in_dim = hid_dim
    return params


def _basic_rnn_ref(x, params):
    """Pure-JAX reference (lax.scan) in PyTorch gate order [i,f,g,o], mirroring the
    kernel's bf16-operand / f32-accumulate matmuls so the check is apples-to-apples."""
    out = x
    for (w_ih, w_hh, b_ih, b_hh) in params:
        H = w_hh.shape[1]
        wih_t = jnp.transpose(w_ih).astype(jnp.bfloat16)
        whh_t = jnp.transpose(w_hh).astype(jnp.bfloat16)
        bias = (b_ih + b_hh).astype(jnp.float32)

        def step(carry, x_t, wih_t=wih_t, whh_t=whh_t, bias=bias, H=H):
            h, c = carry
            gates = (jnp.dot(x_t.astype(jnp.bfloat16), wih_t,
                             preferred_element_type=jnp.float32)
                     + jnp.dot(h.astype(jnp.bfloat16), whh_t,
                               preferred_element_type=jnp.float32)
                     + bias)
            i = jax.nn.sigmoid(gates[:, 0 * H:1 * H])
            f = jax.nn.sigmoid(gates[:, 1 * H:2 * H])
            g = jnp.tanh(gates[:, 2 * H:3 * H])
            o = jax.nn.sigmoid(gates[:, 3 * H:4 * H])
            c_new = f * c + i * g
            h_new = o * jnp.tanh(c_new)
            return (h_new, c_new), h_new

        B = out.shape[1]
        h0 = jnp.zeros((B, H), jnp.float32)
        c0 = jnp.zeros((B, H), jnp.float32)
        _, out = jax.lax.scan(step, (h0, c0), out)
    return out


if __name__ == "__main__":
    # BasicRNN(layer_num=2, unit='lstm', emb_dim=32, hid_dim=32, droprate=0.0)
    layer_num, emb_dim, hid_dim = 2, 32, 32
    T, B = 8, 2

    key = jax.random.PRNGKey(0)
    key, kx = jax.random.split(key)
    x = jax.random.normal(kx, (T, B, emb_dim), jnp.float32)
    params = init_basic_rnn_params(key, layer_num, emb_dim, hid_dim)

    fwd = jax.jit(basic_rnn_forward)
    out = jax.block_until_ready(fwd(x, params))

    ref = jax.block_until_ready(_basic_rnn_ref(x, params))
    assert out.shape == (T, B, hid_dim), out.shape
    err = float(jnp.max(jnp.abs(out - ref)))
    assert err < 5e-3, f"max abs err {err}"
    print("KERNEL_OK")
</pallas_src>

<mosaic_0001>
module attributes {stable_mosaic.version = 11 : i64} {
  func.func @_stacked_lstm_kernel(%arg0: i32, %arg1: memref<64x32xbf16, #tpu.memory_space<vmem>>, %arg2: memref<32x128xbf16, #tpu.memory_space<vmem>>, %arg3: memref<32x128xbf16, #tpu.memory_space<vmem>>, %arg4: memref<1x128xf32, #tpu.memory_space<vmem>>, %arg5: memref<32x128xbf16, #tpu.memory_space<vmem>>, %arg6: memref<32x128xbf16, #tpu.memory_space<vmem>>, %arg7: memref<1x128xf32, #tpu.memory_space<vmem>>, %arg8: memref<64x32xf32, #tpu.memory_space<vmem>>, %arg9: memref<64x128xf32, #tpu.memory_space<vmem>>, %arg10: memref<64x32xbf16, #tpu.memory_space<vmem>>, %arg11: memref<2x8x32xf32, #tpu.memory_space<vmem>>, %arg12: memref<2x8x32xf32, #tpu.memory_space<vmem>>) attributes {dimension_semantics = [#tpu.dimension_semantics<arbitrary>], iteration_bounds = array<i64: 1>, scalar_prefetch = 0 : i64, scratch_operands = 4 : i64, tpu.core_type = #tpu.core_type<tc>, window_params = [{transform_indices = @transform_0, window_bounds = array<i64: 64, 32>}, {pipeline_mode = #tpu.pipeline_mode<synchronous>, transform_indices = @transform_1, window_bounds = array<i64: 32, 128>}, {pipeline_mode = #tpu.pipeline_mode<synchronous>, transform_indices = @transform_2, window_bounds = array<i64: 32, 128>}, {pipeline_mode = #tpu.pipeline_mode<synchronous>, transform_indices = @transform_3, window_bounds = array<i64: 1, 128>}, {pipeline_mode = #tpu.pipeline_mode<synchronous>, transform_indices = @transform_4, window_bounds = array<i64: 32, 128>}, {pipeline_mode = #tpu.pipeline_mode<synchronous>, transform_indices = @transform_5, window_bounds = array<i64: 32, 128>}, {pipeline_mode = #tpu.pipeline_mode<synchronous>, transform_indices = @transform_6, window_bounds = array<i64: 1, 128>}, {transform_indices = @transform_7, window_bounds = array<i64: 64, 32>}]} {
    %c0_i32 = arith.constant 0 : i32
    %0 = arith.cmpi eq, %arg0, %c0_i32 : i32
    %1 = arith.extui %0 : i1 to i32
    %c0_i32_0 = arith.constant 0 : i32
    %2 = arith.cmpi ne, %1, %c0_i32_0 : i32
    scf.if %2 {
      %cst_134 = arith.constant 0.000000e+00 : f32
      %447 = vector.broadcast %cst_134 : f32 to vector<2x8x32xf32>
      %c0_135 = arith.constant 0 : index
      %c0_136 = arith.constant 0 : index
      %c0_137 = arith.constant 0 : index
      %448 = vector.load %arg11[%c0_135, %c0_136, %c0_137] : memref<2x8x32xf32, #tpu.memory_space<vmem>>, vector<2x8x32xf32>
      tpu.vector_store %arg11[%c0_135, %c0_136, %c0_137], %447 {strides = array<i32>} : memref<2x8x32xf32, #tpu.memory_space<vmem>>, vector<2x8x32xf32>,
      %cst_138 = arith.constant 0.000000e+00 : f32
      %449 = vector.broadcast %cst_138 : f32 to vector<2x8x32xf32>
      %c0_139 = arith.constant 0 : index
      %c0_140 = arith.constant 0 : index
      %c0_141 = arith.constant 0 : index
      %450 = vector.load %arg12[%c0_139, %c0_140, %c0_141] : memref<2x8x32xf32, #tpu.memory_space<vmem>>, vector<2x8x32xf32>
      tpu.vector_store %arg12[%c0_139, %c0_140, %c0_141], %449 {strides = array<i32>} : memref<2x8x32xf32, #tpu.memory_space<vmem>>, vector<2x8x32xf32>,
    } else {
    }
    %c0 = arith.constant 0 : index
    %c0_1 = arith.constant 0 : index
    %3 = vector.load %arg2[%c0, %c0_1] : memref<32x128xbf16, #tpu.memory_space<vmem>>, vector<32x128xbf16>
    %c0_2 = arith.constant 0 : index
    %c0_3 = arith.constant 0 : index
    %4 = vector.load %arg3[%c0_2, %c0_3] : memref<32x128xbf16, #tpu.memory_space<vmem>>, vector<32x128xbf16>
    %c0_4 = arith.constant 0 : index
    %c0_5 = arith.constant 0 : index
    %5 = vector.load %arg4[%c0_4, %c0_5] : memref<1x128xf32, #tpu.memory_space<vmem>>, vector<1x128xf32>
    %c0_6 = arith.constant 0 : index
    %c0_7 = arith.constant 0 : index
    %6 = vector.load %arg1[%c0_6, %c0_7] : memref<64x32xbf16, #tpu.memory_space<vmem>>, vector<64x32xbf16>
    %cst = arith.constant dense<0.000000e+00> : vector<64x128xf32>
    %7 = tpu.matmul %6, %3, %cst {dimension_numbers = #tpu.dot_dimension_numbers<[1], [0], [0], [1], [0, 0, 1, 1], [], []>} : vector<64x32xbf16>, vector<32x128xbf16>, vector<64x128xf32> -> vector<64x128xf32>
    %8 = vector.broadcast %5 : vector<1x128xf32> to vector<64x128xf32>
    %9 = arith.addf %7, %8 : vector<64x128xf32>
    %c0_8 = arith.constant 0 : index
    %c0_9 = arith.constant 0 : index
    %10 = vector.load %arg9[%c0_8, %c0_9] : memref<64x128xf32, #tpu.memory_space<vmem>>, vector<64x128xf32>
    tpu.vector_store %arg9[%c0_8, %c0_9], %9 {strides = array<i32>} : memref<64x128xf32, #tpu.memory_space<vmem>>, vector<64x128xf32>,
    %c0_10 = arith.constant 0 : index
    %c0_11 = arith.constant 0 : index
    %c0_12 = arith.constant 0 : index
    %11 = vector.load %arg11[%c0_10, %c0_11, %c0_12] : memref<2x8x32xf32, #tpu.memory_space<vmem>>, vector<1x8x32xf32>
    %12 = vector.shape_cast %11 : vector<1x8x32xf32> to vector<8x32xf32>
    %c0_13 = arith.constant 0 : index
    %c0_14 = arith.constant 0 : index
    %c0_15 = arith.constant 0 : index
    %13 = vector.load %arg12[%c0_13, %c0_14, %c0_15] : memref<2x8x32xf32, #tpu.memory_space<vmem>>, vector<1x8x32xf32>
    %14 = vector.shape_cast %13 : vector<1x8x32xf32> to vector<8x32xf32>
    %c0_i32_16 = arith.constant 0 : i32
    %c8_i32 = arith.constant 8 : i32
    %15 = arith.muli %c0_i32_16, %c8_i32 : i32
    %16 = tpu.assume_multiple %15, 8 : i32
    %17 = arith.index_cast %16 : i32 to index
    %c0_17 = arith.constant 0 : index
    %18 = vector.load %arg9[%17, %c0_17] : memref<64x128xf32, #tpu.memory_space<vmem>>, vector<8x128xf32>
    %19 = arith.truncf %12 : vector<8x32xf32> to vector<8x32xbf16>
    %cst_18 = arith.constant dense<0.000000e+00> : vector<8x128xf32>
    %20 = tpu.matmul %19, %4, %cst_18 {dimension_numbers = #tpu.dot_dimension_numbers<[1], [0], [0], [1], [0, 0, 1, 1], [], []>} : vector<8x32xbf16>, vector<32x128xbf16>, vector<8x128xf32> -> vector<8x128xf32>
    %21 = arith.addf %18, %20 : vector<8x128xf32>
    %22 = vector.extract_strided_slice %21 {offsets = [0, 0], sizes = [8, 96], strides = [1, 1]} : vector<8x128xf32> to vector<8x96xf32>
    %23 = arith.negf %22 : vector<8x96xf32>
    %24 = math.exp %23 : vector<8x96xf32>
    %cst_19 = arith.constant 1.000000e+00 : f32
    %25 = vector.broadcast %cst_19 : f32 to vector<8x96xf32>
    %26 = arith.addf %25, %24 : vector<8x96xf32>
    %27 = arith.divf %25, %26 : vector<8x96xf32>
    %28 = vector.extract_strided_slice %27 {offsets = [0, 0], sizes = [8, 32], strides = [1, 1]} : vector<8x96xf32> to vector<8x32xf32>
    %29 = vector.extract_strided_slice %27 {offsets = [0, 32], sizes = [8, 32], strides = [1, 1]} : vector<8x96xf32> to vector<8x32xf32>
    %30 = vector.extract_strided_slice %27 {offsets = [0, 64], sizes = [8, 32], strides = [1, 1]} : vector<8x96xf32> to vector<8x32xf32>
    %31 = vector.extract_strided_slice %21 {offsets = [0, 96], sizes = [8, 32], strides = [1, 1]} : vector<8x128xf32> to vector<8x32xf32>
    %32 = math.tanh %31 : vector<8x32xf32>
    %33 = arith.mulf %29, %14 : vector<8x32xf32>
    %34 = arith.mulf %28, %32 : vector<8x32xf32>
    %35 = arith.addf %33, %34 : vector<8x32xf32>
    %36 = math.tanh %35 : vector<8x32xf32>
    %37 = arith.mulf %30, %36 : vector<8x32xf32>
    %38 = arith.truncf %37 : vector<8x32xf32> to vector<8x32xbf16>
    %39 = arith.index_cast %16 : i32 to index
    %c0_20 = arith.constant 0 : index
    %40 = vector.load %arg10[%39, %c0_20] : memref<64x32xbf16, #tpu.memory_space<vmem>>, vector<8x32xbf16>
    tpu.vector_store %arg10[%39, %c0_20], %38 {strides = array<i32>} : memref<64x32xbf16, #tpu.memory_space<vmem>>, vector<8x32xbf16>,
    %c1_i32 = arith.constant 1 : i32
    %c8_i32_21 = arith.constant 8 : i32
    %41 = arith.muli %c1_i32, %c8_i32_21 : i32
    %42 = tpu.assume_multiple %41, 8 : i32
    %43 = arith.index_cast %42 : i32 to index
    %c0_22 = arith.constant 0 : index
    %44 = vector.load %arg9[%43, %c0_22] : memref<64x128xf32, #tpu.memory_space<vmem>>, vector<8x128xf32>
    %45 = arith.truncf %37 : vector<8x32xf32> to vector<8x32xbf16>
    %cst_23 = arith.constant dense<0.000000e+00> : vector<8x128xf32>
    %46 = tpu.matmul %45, %4, %cst_23 {dimension_numbers = #tpu.dot_dimension_numbers<[1], [0], [0], [1], [0, 0, 1, 1], [], []>} : vector<8x32xbf16>, vector<32x128xbf16>, vector<8x128xf32> -> vector<8x128xf32>
    %47 = arith.addf %44, %46 : vector<8x128xf32>
    %48 = vector.extract_strided_slice %47 {offsets = [0, 0], sizes = [8, 96], strides = [1, 1]} : vector<8x128xf32> to vector<8x96xf32>
    %49 = arith.negf %48 : vector<8x96xf32>
    %50 = math.exp %49 : vector<8x96xf32>
    %cst_24 = arith.constant 1.000000e+00 : f32
    %51 = vector.broadcast %cst_24 : f32 to vector<8x96xf32>
    %52 = arith.addf %51, %50 : vector<8x96xf32>
    %53 = arith.divf %51, %52 : vector<8x96xf32>
    %54 = vector.extract_strided_slice %53 {offsets = [0, 0], sizes = [8, 32], strides = [1, 1]} : vector<8x96xf32> to vector<8x32xf32>
    %55 = vector.extract_strided_slice %53 {offsets = [0, 32], sizes = [8, 32], strides = [1, 1]} : vector<8x96xf32> to vector<8x32xf32>
    %56 = vector.extract_strided_slice %53 {offsets = [0, 64], sizes = [8, 32], strides = [1, 1]} : vector<8x96xf32> to vector<8x32xf32>
    %57 = vector.extract_strided_slice %47 {offsets = [0, 96], sizes = [8, 32], strides = [1, 1]} : vector<8x128xf32> to vector<8x32xf32>
    %58 = math.tanh %57 : vector<8x32xf32>
    %59 = arith.mulf %55, %35 : vector<8x32xf32>
    %60 = arith.mulf %54, %58 : vector<8x32xf32>
    %61 = arith.addf %59, %60 : vector<8x32xf32>
    %62 = math.tanh %61 : vector<8x32xf32>
    %63 = arith.mulf %56, %62 : vector<8x32xf32>
    %64 = arith.truncf %63 : vector<8x32xf32> to vector<8x32xbf16>
    %65 = arith.index_cast %42 : i32 to index
    %c0_25 = arith.constant 0 : index
    %66 = vector.load %arg10[%65, %c0_25] : memref<64x32xbf16, #tpu.memory_space<vmem>>, vector<8x32xbf16>
    tpu.vector_store %arg10[%65, %c0_25], %64 {strides = array<i32>} : memref<64x32xbf16, #tpu.memory_space<vmem>>, vector<8x32xbf16>,
    %c2_i32 = arith.constant 2 : i32
    %c8_i32_26 = arith.constant 8 : i32
    %67 = arith.muli %c2_i32, %c8_i32_26 : i32
    %68 = tpu.assume_multiple %67, 8 : i32
    %69 = arith.index_cast %68 : i32 to index
    %c0_27 = arith.constant 0 : index
    %70 = vector.load %arg9[%69, %c0_27] : memref<64x128xf32, #tpu.memory_space<vmem>>, vector<8x128xf32>
    %71 = arith.truncf %63 : vector<8x32xf32> to vector<8x32xbf16>
    %cst_28 = arith.constant dense<0.000000e+00> : vector<8x128xf32>
    %72 = tpu.matmul %71, %4, %cst_28 {dimension_numbers = #tpu.dot_dimension_numbers<[1], [0], [0], [1], [0, 0, 1, 1], [], []>} : vector<8x32xbf16>, vector<32x128xbf16>, vector<8x128xf32> -> vector<8x128xf32>
    %73 = arith.addf %70, %72 : vector<8x128xf32>
    %74 = vector.extract_strided_slice %73 {offsets = [0, 0], sizes = [8, 96], strides = [1, 1]} : vector<8x128xf32> to vector<8x96xf32>
    %75 = arith.negf %74 : vector<8x96xf32>
    %76 = math.exp %75 : vector<8x96xf32>
    %cst_29 = arith.constant 1.000000e+00 : f32
    %77 = vector.broadcast %cst_29 : f32 to vector<8x96xf32>
    %78 = arith.addf %77, %76 : vector<8x96xf32>
    %79 = arith.divf %77, %78 : vector<8x96xf32>
    %80 = vector.extract_strided_slice %79 {offsets = [0, 0], sizes = [8, 32], strides = [1, 1]} : vector<8x96xf32> to vector<8x32xf32>
    %81 = vector.extract_strided_slice %79 {offsets = [0, 32], sizes = [8, 32], strides = [1, 1]} : vector<8x96xf32> to vector<8x32xf32>
    %82 = vector.extract_strided_slice %79 {offsets = [0, 64], sizes = [8, 32], strides = [1, 1]} : vector<8x96xf32> to vector<8x32xf32>
    %83 = vector.extract_strided_slice %73 {offsets = [0, 96], sizes = [8, 32], strides = [1, 1]} : vector<8x128xf32> to vector<8x32xf32>
    %84 = math.tanh %83 : vector<8x32xf32>
    %85 = arith.mulf %81, %61 : vector<8x32xf32>
    %86 = arith.mulf %80, %84 : vector<8x32xf32>
    %87 = arith.addf %85, %86 : vector<8x32xf32>
    %88 = math.tanh %87 : vector<8x32xf32>
    %89 = arith.mulf %82, %88 : vector<8x32xf32>
    %90 = arith.truncf %89 : vector<8x32xf32> to vector<8x32xbf16>
    %91 = arith.index_cast %68 : i32 to index
    %c0_30 = arith.constant 0 : index
    %92 = vector.load %arg10[%91, %c0_30] : memref<64x32xbf16, #tpu.memory_space<vmem>>, vector<8x32xbf16>
    tpu.vector_store %arg10[%91, %c0_30], %90 {strides = array<i32>} : memref<64x32xbf16, #tpu.memory_space<vmem>>, vector<8x32xbf16>,
    %c3_i32 = arith.constant 3 : i32
    %c8_i32_31 = arith.constant 8 : i32
    %93 = arith.muli %c3_i32, %c8_i32_31 : i32
    %94 = tpu.assume_multiple %93, 8 : i32
    %95 = arith.index_cast %94 : i32 to index
    %c0_32 = arith.constant 0 : index
    %96 = vector.load %arg9[%95, %c0_32] : memref<64x128xf32, #tpu.memory_space<vmem>>, vector<8x128xf32>
    %97 = arith.truncf %89 : vector<8x32xf32> to vector<8x32xbf16>
    %cst_33 = arith.constant dense<0.000000e+00> : vector<8x128xf32>
    %98 = tpu.matmul %97, %4, %cst_33 {dimension_numbers = #tpu.dot_dimension_numbers<[1], [0], [0], [1], [0, 0, 1, 1], [], []>} : vector<8x32xbf16>, vector<32x128xbf16>, vector<8x128xf32> -> vector<8x128xf32>
    %99 = arith.addf %96, %98 : vector<8x128xf32>
    %100 = vector.extract_strided_slice %99 {offsets = [0, 0], sizes = [8, 96], strides = [1, 1]} : vector<8x128xf32> to vector<8x96xf32>
    %101 = arith.negf %100 : vector<8x96xf32>
    %102 = math.exp %101 : vector<8x96xf32>
    %cst_34 = arith.constant 1.000000e+00 : f32
    %103 = vector.broadcast %cst_34 : f32 to vector<8x96xf32>
    %104 = arith.addf %103, %102 : vector<8x96xf32>
    %105 = arith.divf %103, %104 : vector<8x96xf32>
    %106 = vector.extract_strided_slice %105 {offsets = [0, 0], sizes = [8, 32], strides = [1, 1]} : vector<8x96xf32> to vector<8x32xf32>
    %107 = vector.extract_strided_slice %105 {offsets = [0, 32], sizes = [8, 32], strides = [1, 1]} : vector<8x96xf32> to vector<8x32xf32>
    %108 = vector.extract_strided_slice %105 {offsets = [0, 64], sizes = [8, 32], strides = [1, 1]} : vector<8x96xf32> to vector<8x32xf32>
    %109 = vector.extract_strided_slice %99 {offsets = [0, 96], sizes = [8, 32], strides = [1, 1]} : vector<8x128xf32> to vector<8x32xf32>
    %110 = math.tanh %109 : vector<8x32xf32>
    %111 = arith.mulf %107, %87 : vector<8x32xf32>
    %112 = arith.mulf %106, %110 : vector<8x32xf32>
    %113 = arith.addf %111, %112 : vector<8x32xf32>
    %114 = math.tanh %113 : vector<8x32xf32>
    %115 = arith.mulf %108, %114 : vector<8x32xf32>
    %116 = arith.truncf %115 : vector<8x32xf32> to vector<8x32xbf16>
    %117 = arith.index_cast %94 : i32 to index
    %c0_35 = arith.constant 0 : index
    %118 = vector.load %arg10[%117, %c0_35] : memref<64x32xbf16, #tpu.memory_space<vmem>>, vector<8x32xbf16>
    tpu.vector_store %arg10[%117, %c0_35], %116 {strides = array<i32>} : memref<64x32xbf16, #tpu.memory_space<vmem>>, vector<8x32xbf16>,
    %c4_i32 = arith.constant 4 : i32
    %c8_i32_36 = arith.constant 8 : i32
    %119 = arith.muli %c4_i32, %c8_i32_36 : i32
    %120 = tpu.assume_multiple %119, 8 : i32
    %121 = arith.index_cast %120 : i32 to index
    %c0_37 = arith.constant 0 : index
    %122 = vector.load %arg9[%121, %c0_37] : memref<64x128xf32, #tpu.memory_space<vmem>>, vector<8x128xf32>
    %123 = arith.truncf %115 : vector<8x32xf32> to vector<8x32xbf16>
    %cst_38 = arith.constant dense<0.000000e+00> : vector<8x128xf32>
    %124 = tpu.matmul %123, %4, %cst_38 {dimension_numbers = #tpu.dot_dimension_numbers<[1], [0], [0], [1], [0, 0, 1, 1], [], []>} : vector<8x32xbf16>, vector<32x128xbf16>, vector<8x128xf32> -> vector<8x128xf32>
    %125 = arith.addf %122, %124 : vector<8x128xf32>
    %126 = vector.extract_strided_slice %125 {offsets = [0, 0], sizes = [8, 96], strides = [1, 1]} : vector<8x128xf32> to vector<8x96xf32>
    %127 = arith.negf %126 : vector<8x96xf32>
    %128 = math.exp %127 : vector<8x96xf32>
    %cst_39 = arith.constant 1.000000e+00 : f32
    %129 = vector.broadcast %cst_39 : f32 to vector<8x96xf32>
    %130 = arith.addf %129, %128 : vector<8x96xf32>
    %131 = arith.divf %129, %130 : vector<8x96xf32>
    %132 = vector.extract_strided_slice %131 {offsets = [0, 0], sizes = [8, 32], strides = [1, 1]} : vector<8x96xf32> to vector<8x32xf32>
    %133 = vector.extract_strided_slice %131 {offsets = [0, 32], sizes = [8, 32], strides = [1, 1]} : vector<8x96xf32> to vector<8x32xf32>
    %134 = vector.extract_strided_slice %131 {offsets = [0, 64], sizes = [8, 32], strides = [1, 1]} : vector<8x96xf32> to vector<8x32xf32>
    %135 = vector.extract_strided_slice %125 {offsets = [0, 96], sizes = [8, 32], strides = [1, 1]} : vector<8x128xf32> to vector<8x32xf32>
    %136 = math.tanh %135 : vector<8x32xf32>
    %137 = arith.mulf %133, %113 : vector<8x32xf32>
    %138 = arith.mulf %132, %136 : vector<8x32xf32>
    %139 = arith.addf %137, %138 : vector<8x32xf32>
    %140 = math.tanh %139 : vector<8x32xf32>
    %141 = arith.mulf %134, %140 : vector<8x32xf32>
    %142 = arith.truncf %141 : vector<8x32xf32> to vector<8x32xbf16>
    %143 = arith.index_cast %120 : i32 to index
    %c0_40 = arith.constant 0 : index
    %144 = vector.load %arg10[%143, %c0_40] : memref<64x32xbf16, #tpu.memory_space<vmem>>, vector<8x32xbf16>
    tpu.vector_store %arg10[%143, %c0_40], %142 {strides = array<i32>} : memref<64x32xbf16, #tpu.memory_space<vmem>>, vector<8x32xbf16>,
    %c5_i32 = arith.constant 5 : i32
    %c8_i32_41 = arith.constant 8 : i32
    %145 = arith.muli %c5_i32, %c8_i32_41 : i32
    %146 = tpu.assume_multiple %145, 8 : i32
    %147 = arith.index_cast %146 : i32 to index
    %c0_42 = arith.constant 0 : index
    %148 = vector.load %arg9[%147, %c0_42] : memref<64x128xf32, #tpu.memory_space<vmem>>, vector<8x128xf32>
    %149 = arith.truncf %141 : vector<8x32xf32> to vector<8x32xbf16>
    %cst_43 = arith.constant dense<0.000000e+00> : vector<8x128xf32>
    %150 = tpu.matmul %149, %4, %cst_43 {dimension_numbers = #tpu.dot_dimension_numbers<[1], [0], [0], [1], [0, 0, 1, 1], [], []>} : vector<8x32xbf16>, vector<32x128xbf16>, vector<8x128xf32> -> vector<8x128xf32>
    %151 = arith.addf %148, %150 : vector<8x128xf32>
    %152 = vector.extract_strided_slice %151 {offsets = [0, 0], sizes = [8, 96], strides = [1, 1]} : vector<8x128xf32> to vector<8x96xf32>
    %153 = arith.negf %152 : vector<8x96xf32>
    %154 = math.exp %153 : vector<8x96xf32>
    %cst_44 = arith.constant 1.000000e+00 : f32
    %155 = vector.broadcast %cst_44 : f32 to vector<8x96xf32>
    %156 = arith.addf %155, %154 : vector<8x96xf32>
    %157 = arith.divf %155, %156 : vector<8x96xf32>
    %158 = vector.extract_strided_slice %157 {offsets = [0, 0], sizes = [8, 32], strides = [1, 1]} : vector<8x96xf32> to vector<8x32xf32>
    %159 = vector.extract_strided_slice %157 {offsets = [0, 32], sizes = [8, 32], strides = [1, 1]} : vector<8x96xf32> to vector<8x32xf32>
    %160 = vector.extract_strided_slice %157 {offsets = [0, 64], sizes = [8, 32], strides = [1, 1]} : vector<8x96xf32> to vector<8x32xf32>
    %161 = vector.extract_strided_slice %151 {offsets = [0, 96], sizes = [8, 32], strides = [1, 1]} : vector<8x128xf32> to vector<8x32xf32>
    %162 = math.tanh %161 : vector<8x32xf32>
    %163 = arith.mulf %159, %139 : vector<8x32xf32>
    %164 = arith.mulf %158, %162 : vector<8x32xf32>
    %165 = arith.addf %163, %164 : vector<8x32xf32>
    %166 = math.tanh %165 : vector<8x32xf32>
    %167 = arith.mulf %160, %166 : vector<8x32xf32>
    %168 = arith.truncf %167 : vector<8x32xf32> to vector<8x32xbf16>
    %169 = arith.index_cast %146 : i32 to index
    %c0_45 = arith.constant 0 : index
    %170 = vector.load %arg10[%169, %c0_45] : memref<64x32xbf16, #tpu.memory_space<vmem>>, vector<8x32xbf16>
    tpu.vector_store %arg10[%169, %c0_45], %168 {strides = array<i32>} : memref<64x32xbf16, #tpu.memory_space<vmem>>, vector<8x32xbf16>,
    %c6_i32 = arith.constant 6 : i32
    %c8_i32_46 = arith.constant 8 : i32
    %171 = arith.muli %c6_i32, %c8_i32_46 : i32
    %172 = tpu.assume_multiple %171, 8 : i32
    %173 = arith.index_cast %172 : i32 to index
    %c0_47 = arith.constant 0 : index
    %174 = vector.load %arg9[%173, %c0_47] : memref<64x128xf32, #tpu.memory_space<vmem>>, vector<8x128xf32>
    %175 = arith.truncf %167 : vector<8x32xf32> to vector<8x32xbf16>
    %cst_48 = arith.constant dense<0.000000e+00> : vector<8x128xf32>
    %176 = tpu.matmul %175, %4, %cst_48 {dimension_numbers = #tpu.dot_dimension_numbers<[1], [0], [0], [1], [0, 0, 1, 1], [], []>} : vector<8x32xbf16>, vector<32x128xbf16>, vector<8x128xf32> -> vector<8x128xf32>
    %177 = arith.addf %174, %176 : vector<8x128xf32>
    %178 = vector.extract_strided_slice %177 {offsets = [0, 0], sizes = [8, 96], strides = [1, 1]} : vector<8x128xf32> to vector<8x96xf32>
    %179 = arith.negf %178 : vector<8x96xf32>
    %180 = math.exp %179 : vector<8x96xf32>
    %cst_49 = arith.constant 1.000000e+00 : f32
    %181 = vector.broadcast %cst_49 : f32 to vector<8x96xf32>
    %182 = arith.addf %181, %180 : vector<8x96xf32>
    %183 = arith.divf %181, %182 : vector<8x96xf32>
    %184 = vector.extract_strided_slice %183 {offsets = [0, 0], sizes = [8, 32], strides = [1, 1]} : vector<8x96xf32> to vector<8x32xf32>
    %185 = vector.extract_strided_slice %183 {offsets = [0, 32], sizes = [8, 32], strides = [1, 1]} : vector<8x96xf32> to vector<8x32xf32>
    %186 = vector.extract_strided_slice %183 {offsets = [0, 64], sizes = [8, 32], strides = [1, 1]} : vector<8x96xf32> to vector<8x32xf32>
    %187 = vector.extract_strided_slice %177 {offsets = [0, 96], sizes = [8, 32], strides = [1, 1]} : vector<8x128xf32> to vector<8x32xf32>
    %188 = math.tanh %187 : vector<8x32xf32>
    %189 = arith.mulf %185, %165 : vector<8x32xf32>
    %190 = arith.mulf %184, %188 : vector<8x32xf32>
    %191 = arith.addf %189, %190 : vector<8x32xf32>
    %192 = math.tanh %191 : vector<8x32xf32>
    %193 = arith.mulf %186, %192 : vector<8x32xf32>
    %194 = arith.truncf %193 : vector<8x32xf32> to vector<8x32xbf16>
    %195 = arith.index_cast %172 : i32 to index
    %c0_50 = arith.constant 0 : index
    %196 = vector.load %arg10[%195, %c0_50] : memref<64x32xbf16, #tpu.memory_space<vmem>>, vector<8x32xbf16>
    tpu.vector_store %arg10[%195, %c0_50], %194 {strides = array<i32>} : memref<64x32xbf16, #tpu.memory_space<vmem>>, vector<8x32xbf16>,
    %c7_i32 = arith.constant 7 : i32
    %c8_i32_51 = arith.constant 8 : i32
    %197 = arith.muli %c7_i32, %c8_i32_51 : i32
    %198 = tpu.assume_multiple %197, 8 : i32
    %199 = arith.index_cast %198 : i32 to index
    %c0_52 = arith.constant 0 : index
    %200 = vector.load %arg9[%199, %c0_52] : memref<64x128xf32, #tpu.memory_space<vmem>>, vector<8x128xf32>
    %201 = arith.truncf %193 : vector<8x32xf32> to vector<8x32xbf16>
    %cst_53 = arith.constant dense<0.000000e+00> : vector<8x128xf32>
    %202 = tpu.matmul %201, %4, %cst_53 {dimension_numbers = #tpu.dot_dimension_numbers<[1], [0], [0], [1], [0, 0, 1, 1], [], []>} : vector<8x32xbf16>, vector<32x128xbf16>, vector<8x128xf32> -> vector<8x128xf32>
    %203 = arith.addf %200, %202 : vector<8x128xf32>
    %204 = vector.extract_strided_slice %203 {offsets = [0, 0], sizes = [8, 96], strides = [1, 1]} : vector<8x128xf32> to vector<8x96xf32>
    %205 = arith.negf %204 : vector<8x96xf32>
    %206 = math.exp %205 : vector<8x96xf32>
    %cst_54 = arith.constant 1.000000e+00 : f32
    %207 = vector.broadcast %cst_54 : f32 to vector<8x96xf32>
    %208 = arith.addf %207, %206 : vector<8x96xf32>
    %209 = arith.divf %207, %208 : vector<8x96xf32>
    %210 = vector.extract_strided_slice %209 {offsets = [0, 0], sizes = [8, 32], strides = [1, 1]} : vector<8x96xf32> to vector<8x32xf32>
    %211 = vector.extract_strided_slice %209 {offsets = [0, 32], sizes = [8, 32], strides = [1, 1]} : vector<8x96xf32> to vector<8x32xf32>
    %212 = vector.extract_strided_slice %209 {offsets = [0, 64], sizes = [8, 32], strides = [1, 1]} : vector<8x96xf32> to vector<8x32xf32>
    %213 = vector.extract_strided_slice %203 {offsets = [0, 96], sizes = [8, 32], strides = [1, 1]} : vector<8x128xf32> to vector<8x32xf32>
    %214 = math.tanh %213 : vector<8x32xf32>
    %215 = arith.mulf %211, %191 : vector<8x32xf32>
    %216 = arith.mulf %210, %214 : vector<8x32xf32>
    %217 = arith.addf %215, %216 : vector<8x32xf32>
    %218 = math.tanh %217 : vector<8x32xf32>
    %219 = arith.mulf %212, %218 : vector<8x32xf32>
    %220 = arith.truncf %219 : vector<8x32xf32> to vector<8x32xbf16>
    %221 = arith.index_cast %198 : i32 to index
    %c0_55 = arith.constant 0 : index
    %222 = vector.load %arg10[%221, %c0_55] : memref<64x32xbf16, #tpu.memory_space<vmem>>, vector<8x32xbf16>
    tpu.vector_store %arg10[%221, %c0_55], %220 {strides = array<i32>} : memref<64x32xbf16, #tpu.memory_space<vmem>>, vector<8x32xbf16>,
    %c8_i32_56 = arith.constant 8 : i32
    %c0_57 = arith.constant 0 : index
    %c0_58 = arith.constant 0 : index
    %c0_59 = arith.constant 0 : index
    %223 = vector.load %arg11[%c0_57, %c0_58, %c0_59] : memref<2x8x32xf32, #tpu.memory_space<vmem>>, vector<1x8x32xf32>
    %224 = vector.shape_cast %223 : vector<1x8x32xf32> to vector<8x32xf32>
    %225 = vector.shape_cast %219 : vector<8x32xf32> to vector<1x8x32xf32>
    tpu.vector_store %arg11[%c0_57, %c0_58, %c0_59], %225 {strides = array<i32>} : memref<2x8x32xf32, #tpu.memory_space<vmem>>, vector<1x8x32xf32>,
    %c0_60 = arith.constant 0 : index
    %c0_61 = arith.constant 0 : index
    %c0_62 = arith.constant 0 : index
    %226 = vector.load %arg12[%c0_60, %c0_61, %c0_62] : memref<2x8x32xf32, #tpu.memory_space<vmem>>, vector<1x8x32xf32>
    %227 = vector.shape_cast %226 : vector<1x8x32xf32> to vector<8x32xf32>
    %228 = vector.shape_cast %217 : vector<8x32xf32> to vector<1x8x32xf32>
    tpu.vector_store %arg12[%c0_60, %c0_61, %c0_62], %228 {strides = array<i32>} : memref<2x8x32xf32, #tpu.memory_space<vmem>>, vector<1x8x32xf32>,
    %c0_63 = arith.constant 0 : index
    %c0_64 = arith.constant 0 : index
    %229 = vector.load %arg5[%c0_63, %c0_64] : memref<32x128xbf16, #tpu.memory_space<vmem>>, vector<32x128xbf16>
    %c0_65 = arith.constant 0 : index
    %c0_66 = arith.constant 0 : index
    %230 = vector.load %arg6[%c0_65, %c0_66] : memref<32x128xbf16, #tpu.memory_space<vmem>>, vector<32x128xbf16>
    %c0_67 = arith.constant 0 : index
    %c0_68 = arith.constant 0 : index
    %231 = vector.load %arg7[%c0_67, %c0_68] : memref<1x128xf32, #tpu.memory_space<vmem>>, vector<1x128xf32>
    %c0_69 = arith.constant 0 : index
    %c0_70 = arith.constant 0 : index
    %232 = vector.load %arg10[%c0_69, %c0_70] : memref<64x32xbf16, #tpu.memory_space<vmem>>, vector<64x32xbf16>
    %cst_71 = arith.constant dense<0.000000e+00> : vector<64x128xf32>
    %233 = tpu.matmul %232, %229, %cst_71 {dimension_numbers = #tpu.dot_dimension_numbers<[1], [0], [0], [1], [0, 0, 1, 1], [], []>} : vector<64x32xbf16>, vector<32x128xbf16>, vector<64x128xf32> -> vector<64x128xf32>
    %234 = vector.broadcast %231 : vector<1x128xf32> to vector<64x128xf32>
    %235 = arith.addf %233, %234 : vector<64x128xf32>
    %c0_72 = arith.constant 0 : index
    %c0_73 = arith.constant 0 : index
    %236 = vector.load %arg9[%c0_72, %c0_73] : memref<64x128xf32, #tpu.memory_space<vmem>>, vector<64x128xf32>
    tpu.vector_store %arg9[%c0_72, %c0_73], %235 {strides = array<i32>} : memref<64x128xf32, #tpu.memory_space<vmem>>, vector<64x128xf32>,
    %c1 = arith.constant 1 : index
    %c0_74 = arith.constant 0 : index
    %c0_75 = arith.constant 0 : index
    %237 = vector.load %arg11[%c1, %c0_74, %c0_75] : memref<2x8x32xf32, #tpu.memory_space<vmem>>, vector<1x8x32xf32>
    %238 = vector.shape_cast %237 : vector<1x8x32xf32> to vector<8x32xf32>
    %c1_76 = arith.constant 1 : index
    %c0_77 = arith.constant 0 : index
    %c0_78 = arith.constant 0 : index
    %239 = vector.load %arg12[%c1_76, %c0_77, %c0_78] : memref<2x8x32xf32, #tpu.memory_space<vmem>>, vector<1x8x32xf32>
    %240 = vector.shape_cast %239 : vector<1x8x32xf32> to vector<8x32xf32>
    %c0_i32_79 = arith.constant 0 : i32
    %c8_i32_80 = arith.constant 8 : i32
    %241 = arith.muli %c0_i32_79, %c8_i32_80 : i32
    %242 = tpu.assume_multiple %241, 8 : i32
    %243 = arith.index_cast %242 : i32 to index
    %c0_81 = arith.constant 0 : index
    %244 = vector.load %arg9[%243, %c0_81] : memref<64x128xf32, #tpu.memory_space<vmem>>, vector<8x128xf32>
    %245 = arith.truncf %238 : vector<8x32xf32> to vector<8x32xbf16>
    %cst_82 = arith.constant dense<0.000000e+00> : vector<8x128xf32>
    %246 = tpu.matmul %245, %230, %cst_82 {dimension_numbers = #tpu.dot_dimension_numbers<[1], [0], [0], [1], [0, 0, 1, 1], [], []>} : vector<8x32xbf16>, vector<32x128xbf16>, vector<8x128xf32> -> vector<8x128xf32>
    %247 = arith.addf %244, %246 : vector<8x128xf32>
    %248 = vector.extract_strided_slice %247 {offsets = [0, 0], sizes = [8, 96], strides = [1, 1]} : vector<8x128xf32> to vector<8x96xf32>
    %249 = arith.negf %248 : vector<8x96xf32>
    %250 = math.exp %249 : vector<8x96xf32>
    %cst_83 = arith.constant 1.000000e+00 : f32
    %251 = vector.broadcast %cst_83 : f32 to vector<8x96xf32>
    %252 = arith.addf %251, %250 : vector<8x96xf32>
    %253 = arith.divf %251, %252 : vector<8x96xf32>
    %254 = vector.extract_strided_slice %253 {offsets = [0, 0], sizes = [8, 32], strides = [1, 1]} : vector<8x96xf32> to vector<8x32xf32>
    %255 = vector.extract_strided_slice %253 {offsets = [0, 32], sizes = [8, 32], strides = [1, 1]} : vector<8x96xf32> to vector<8x32xf32>
    %256 = vector.extract_strided_slice %253 {offsets = [0, 64], sizes = [8, 32], strides = [1, 1]} : vector<8x96xf32> to vector<8x32xf32>
    %257 = vector.extract_strided_slice %247 {offsets = [0, 96], sizes = [8, 32], strides = [1, 1]} : vector<8x128xf32> to vector<8x32xf32>
    %258 = math.tanh %257 : vector<8x32xf32>
    %259 = arith.mulf %255, %240 : vector<8x32xf32>
    %260 = arith.mulf %254, %258 : vector<8x32xf32>
    %261 = arith.addf %259, %260 : vector<8x32xf32>
    %262 = math.tanh %261 : vector<8x32xf32>
    %263 = arith.mulf %256, %262 : vector<8x32xf32>
    %264 = arith.index_cast %242 : i32 to index
    %c0_84 = arith.constant 0 : index
    %265 = vector.load %arg8[%264, %c0_84] : memref<64x32xf32, #tpu.memory_space<vmem>>, vector<8x32xf32>
    tpu.vector_store %arg8[%264, %c0_84], %263 {strides = array<i32>} : memref<64x32xf32, #tpu.memory_space<vmem>>, vector<8x32xf32>,
    %c1_i32_85 = arith.constant 1 : i32
    %c8_i32_86 = arith.constant 8 : i32
    %266 = arith.muli %c1_i32_85, %c8_i32_86 : i32
    %267 = tpu.assume_multiple %266, 8 : i32
    %268 = arith.index_cast %267 : i32 to index
    %c0_87 = arith.constant 0 : index
    %269 = vector.load %arg9[%268, %c0_87] : memref<64x128xf32, #tpu.memory_space<vmem>>, vector<8x128xf32>
    %270 = arith.truncf %263 : vector<8x32xf32> to vector<8x32xbf16>
    %cst_88 = arith.constant dense<0.000000e+00> : vector<8x128xf32>
    %271 = tpu.matmul %270, %230, %cst_88 {dimension_numbers = #tpu.dot_dimension_numbers<[1], [0], [0], [1], [0, 0, 1, 1], [], []>} : vector<8x32xbf16>, vector<32x128xbf16>, vector<8x128xf32> -> vector<8x128xf32>
    %272 = arith.addf %269, %271 : vector<8x128xf32>
    %273 = vector.extract_strided_slice %272 {offsets = [0, 0], sizes = [8, 96], strides = [1, 1]} : vector<8x128xf32> to vector<8x96xf32>
    %274 = arith.negf %273 : vector<8x96xf32>
    %275 = math.exp %274 : vector<8x96xf32>
    %cst_89 = arith.constant 1.000000e+00 : f32
    %276 = vector.broadcast %cst_89 : f32 to vector<8x96xf32>
    %277 = arith.addf %276, %275 : vector<8x96xf32>
    %278 = arith.divf %276, %277 : vector<8x96xf32>
    %279 = vector.extract_strided_slice %278 {offsets = [0, 0], sizes = [8, 32], strides = [1, 1]} : vector<8x96xf32> to vector<8x32xf32>
    %280 = vector.extract_strided_slice %278 {offsets = [0, 32], sizes = [8, 32], strides = [1, 1]} : vector<8x96xf32> to vector<8x32xf32>
    %281 = vector.extract_strided_slice %278 {offsets = [0, 64], sizes = [8, 32], strides = [1, 1]} : vector<8x96xf32> to vector<8x32xf32>
    %282 = vector.extract_strided_slice %272 {offsets = [0, 96], sizes = [8, 32], strides = [1, 1]} : vector<8x128xf32> to vector<8x32xf32>
    %283 = math.tanh %282 : vector<8x32xf32>
    %284 = arith.mulf %280, %261 : vector<8x32xf32>
    %285 = arith.mulf %279, %283 : vector<8x32xf32>
    %286 = arith.addf %284, %285 : vector<8x32xf32>
    %287 = math.tanh %286 : vector<8x32xf32>
    %288 = arith.mulf %281, %287 : vector<8x32xf32>
    %289 = arith.index_cast %267 : i32 to index
    %c0_90 = arith.constant 0 : index
    %290 = vector.load %arg8[%289, %c0_90] : memref<64x32xf32, #tpu.memory_space<vmem>>, vector<8x32xf32>
    tpu.vector_store %arg8[%289, %c0_90], %288 {strides = array<i32>} : memref<64x32xf32, #tpu.memory_space<vmem>>, vector<8x32xf32>,
    %c2_i32_91 = arith.constant 2 : i32
    %c8_i32_92 = arith.constant 8 : i32
    %291 = arith.muli %c2_i32_91, %c8_i32_92 : i32
    %292 = tpu.assume_multiple %291, 8 : i32
    %293 = arith.index_cast %292 : i32 to index
    %c0_93 = arith.constant 0 : index
    %294 = vector.load %arg9[%293, %c0_93] : memref<64x128xf32, #tpu.memory_space<vmem>>, vector<8x128xf32>
    %295 = arith.truncf %288 : vector<8x32xf32> to vector<8x32xbf16>
    %cst_94 = arith.constant dense<0.000000e+00> : vector<8x128xf32>
    %296 = tpu.matmul %295, %230, %cst_94 {dimension_numbers = #tpu.dot_dimension_numbers<[1], [0], [0], [1], [0, 0, 1, 1], [], []>} : vector<8x32xbf16>, vector<32x128xbf16>, vector<8x128xf32> -> vector<8x128xf32>
    %297 = arith.addf %294, %296 : vector<8x128xf32>
    %298 = vector.extract_strided_slice %297 {offsets = [0, 0], sizes = [8, 96], strides = [1, 1]} : vector<8x128xf32> to vector<8x96xf32>
    %299 = arith.negf %298 : vector<8x96xf32>
    %300 = math.exp %299 : vector<8x96xf32>
    %cst_95 = arith.constant 1.000000e+00 : f32
    %301 = vector.broadcast %cst_95 : f32 to vector<8x96xf32>
    %302 = arith.addf %301, %300 : vector<8x96xf32>
    %303 = arith.divf %301, %302 : vector<8x96xf32>
    %304 = vector.extract_strided_slice %303 {offsets = [0, 0], sizes = [8, 32], strides = [1, 1]} : vector<8x96xf32> to vector<8x32xf32>
    %305 = vector.extract_strided_slice %303 {offsets = [0, 32], sizes = [8, 32], strides = [1, 1]} : vector<8x96xf32> to vector<8x32xf32>
    %306 = vector.extract_strided_slice %303 {offsets = [0, 64], sizes = [8, 32], strides = [1, 1]} : vector<8x96xf32> to vector<8x32xf32>
    %307 = vector.extract_strided_slice %297 {offsets = [0, 96], sizes = [8, 32], strides = [1, 1]} : vector<8x128xf32> to vector<8x32xf32>
    %308 = math.tanh %307 : vector<8x32xf32>
    %309 = arith.mulf %305, %286 : vector<8x32xf32>
    %310 = arith.mulf %304, %308 : vector<8x32xf32>
    %311 = arith.addf %309, %310 : vector<8x32xf32>
    %312 = math.tanh %311 : vector<8x32xf32>
    %313 = arith.mulf %306, %312 : vector<8x32xf32>
    %314 = arith.index_cast %292 : i32 to index
    %c0_96 = arith.constant 0 : index
    %315 = vector.load %arg8[%314, %c0_96] : memref<64x32xf32, #tpu.memory_space<vmem>>, vector<8x32xf32>
    tpu.vector_store %arg8[%314, %c0_96], %313 {strides = array<i32>} : memref<64x32xf32, #tpu.memory_space<vmem>>, vector<8x32xf32>,
    %c3_i32_97 = arith.constant 3 : i32
    %c8_i32_98 = arith.constant 8 : i32
    %316 = arith.muli %c3_i32_97, %c8_i32_98 : i32
    %317 = tpu.assume_multiple %316, 8 : i32
    %318 = arith.index_cast %317 : i32 to index
    %c0_99 = arith.constant 0 : index
    %319 = vector.load %arg9[%318, %c0_99] : memref<64x128xf32, #tpu.memory_space<vmem>>, vector<8x128xf32>
    %320 = arith.truncf %313 : vector<8x32xf32> to vector<8x32xbf16>
    %cst_100 = arith.constant dense<0.000000e+00> : vector<8x128xf32>
    %321 = tpu.matmul %320, %230, %cst_100 {dimension_numbers = #tpu.dot_dimension_numbers<[1], [0], [0], [1], [0, 0, 1, 1], [], []>} : vector<8x32xbf16>, vector<32x128xbf16>, vector<8x128xf32> -> vector<8x128xf32>
    %322 = arith.addf %319, %321 : vector<8x128xf32>
    %323 = vector.extract_strided_slice %322 {offsets = [0, 0], sizes = [8, 96], strides = [1, 1]} : vector<8x128xf32> to vector<8x96xf32>
    %324 = arith.negf %323 : vector<8x96xf32>
    %325 = math.exp %324 : vector<8x96xf32>
    %cst_101 = arith.constant 1.000000e+00 : f32
    %326 = vector.broadcast %cst_101 : f32 to vector<8x96xf32>
    %327 = arith.addf %326, %325 : vector<8x96xf32>
    %328 = arith.divf %326, %327 : vector<8x96xf32>
    %329 = vector.extract_strided_slice %328 {offsets = [0, 0], sizes = [8, 32], strides = [1, 1]} : vector<8x96xf32> to vector<8x32xf32>
    %330 = vector.extract_strided_slice %328 {offsets = [0, 32], sizes = [8, 32], strides = [1, 1]} : vector<8x96xf32> to vector<8x32xf32>
    %331 = vector.extract_strided_slice %328 {offsets = [0, 64], sizes = [8, 32], strides = [1, 1]} : vector<8x96xf32> to vector<8x32xf32>
    %332 = vector.extract_strided_slice %322 {offsets = [0, 96], sizes = [8, 32], strides = [1, 1]} : vector<8x128xf32> to vector<8x32xf32>
    %333 = math.tanh %332 : vector<8x32xf32>
    %334 = arith.mulf %330, %311 : vector<8x32xf32>
    %335 = arith.mulf %329, %333 : vector<8x32xf32>
    %336 = arith.addf %334, %335 : vector<8x32xf32>
    %337 = math.tanh %336 : vector<8x32xf32>
    %338 = arith.mulf %331, %337 : vector<8x32xf32>
    %339 = arith.index_cast %317 : i32 to index
    %c0_102 = arith.constant 0 : index
    %340 = vector.load %arg8[%339, %c0_102] : memref<64x32xf32, #tpu.memory_space<vmem>>, vector<8x32xf32>
    tpu.vector_store %arg8[%339, %c0_102], %338 {strides = array<i32>} : memref<64x32xf32, #tpu.memory_space<vmem>>, vector<8x32xf32>,
    %c4_i32_103 = arith.constant 4 : i32
    %c8_i32_104 = arith.constant 8 : i32
    %341 = arith.muli %c4_i32_103, %c8_i32_104 : i32
    %342 = tpu.assume_multiple %341, 8 : i32
    %343 = arith.index_cast %342 : i32 to index
    %c0_105 = arith.constant 0 : index
    %344 = vector.load %arg9[%343, %c0_105] : memref<64x128xf32, #tpu.memory_space<vmem>>, vector<8x128xf32>
    %345 = arith.truncf %338 : vector<8x32xf32> to vector<8x32xbf16>
    %cst_106 = arith.constant dense<0.000000e+00> : vector<8x128xf32>
    %346 = tpu.matmul %345, %230, %cst_106 {dimension_numbers = #tpu.dot_dimension_numbers<[1], [0], [0], [1], [0, 0, 1, 1], [], []>} : vector<8x32xbf16>, vector<32x128xbf16>, vector<8x128xf32> -> vector<8x128xf32>
    %347 = arith.addf %344, %346 : vector<8x128xf32>
    %348 = vector.extract_strided_slice %347 {offsets = [0, 0], sizes = [8, 96], strides = [1, 1]} : vector<8x128xf32> to vector<8x96xf32>
    %349 = arith.negf %348 : vector<8x96xf32>
    %350 = math.exp %349 : vector<8x96xf32>
    %cst_107 = arith.constant 1.000000e+00 : f32
    %351 = vector.broadcast %cst_107 : f32 to vector<8x96xf32>
    %352 = arith.addf %351, %350 : vector<8x96xf32>
    %353 = arith.divf %351, %352 : vector<8x96xf32>
    %354 = vector.extract_strided_slice %353 {offsets = [0, 0], sizes = [8, 32], strides = [1, 1]} : vector<8x96xf32> to vector<8x32xf32>
    %355 = vector.extract_strided_slice %353 {offsets = [0, 32], sizes = [8, 32], strides = [1, 1]} : vector<8x96xf32> to vector<8x32xf32>
    %356 = vector.extract_strided_slice %353 {offsets = [0, 64], sizes = [8, 32], strides = [1, 1]} : vector<8x96xf32> to vector<8x32xf32>
    %357 = vector.extract_strided_slice %347 {offsets = [0, 96], sizes = [8, 32], strides = [1, 1]} : vector<8x128xf32> to vector<8x32xf32>
    %358 = math.tanh %357 : vector<8x32xf32>
    %359 = arith.mulf %355, %336 : vector<8x32xf32>
    %360 = arith.mulf %354, %358 : vector<8x32xf32>
    %361 = arith.addf %359, %360 : vector<8x32xf32>
    %362 = math.tanh %361 : vector<8x32xf32>
    %363 = arith.mulf %356, %362 : vector<8x32xf32>
    %364 = arith.index_cast %342 : i32 to index
    %c0_108 = arith.constant 0 : index
    %365 = vector.load %arg8[%364, %c0_108] : memref<64x32xf32, #tpu.memory_space<vmem>>, vector<8x32xf32>
    tpu.vector_store %arg8[%364, %c0_108], %363 {strides = array<i32>} : memref<64x32xf32, #tpu.memory_space<vmem>>, vector<8x32xf32>,
    %c5_i32_109 = arith.constant 5 : i32
    %c8_i32_110 = arith.constant 8 : i32
    %366 = arith.muli %c5_i32_109, %c8_i32_110 : i32
    %367 = tpu.assume_multiple %366, 8 : i32
    %368 = arith.index_cast %367 : i32 to index
    %c0_111 = arith.constant 0 : index
    %369 = vector.load %arg9[%368, %c0_111] : memref<64x128xf32, #tpu.memory_space<vmem>>, vector<8x128xf32>
    %370 = arith.truncf %363 : vector<8x32xf32> to vector<8x32xbf16>
    %cst_112 = arith.constant dense<0.000000e+00> : vector<8x128xf32>
    %371 = tpu.matmul %370, %230, %cst_112 {dimension_numbers = #tpu.dot_dimension_numbers<[1], [0], [0], [1], [0, 0, 1, 1], [], []>} : vector<8x32xbf16>, vector<32x128xbf16>, vector<8x128xf32> -> vector<8x128xf32>
    %372 = arith.addf %369, %371 : vector<8x128xf32>
    %373 = vector.extract_strided_slice %372 {offsets = [0, 0], sizes = [8, 96], strides = [1, 1]} : vector<8x128xf32> to vector<8x96xf32>
    %374 = arith.negf %373 : vector<8x96xf32>
    %375 = math.exp %374 : vector<8x96xf32>
    %cst_113 = arith.constant 1.000000e+00 : f32
    %376 = vector.broadcast %cst_113 : f32 to vector<8x96xf32>
    %377 = arith.addf %376, %375 : vector<8x96xf32>
    %378 = arith.divf %376, %377 : vector<8x96xf32>
    %379 = vector.extract_strided_slice %378 {offsets = [0, 0], sizes = [8, 32], strides = [1, 1]} : vector<8x96xf32> to vector<8x32xf32>
    %380 = vector.extract_strided_slice %378 {offsets = [0, 32], sizes = [8, 32], strides = [1, 1]} : vector<8x96xf32> to vector<8x32xf32>
    %381 = vector.extract_strided_slice %378 {offsets = [0, 64], sizes = [8, 32], strides = [1, 1]} : vector<8x96xf32> to vector<8x32xf32>
    %382 = vector.extract_strided_slice %372 {offsets = [0, 96], sizes = [8, 32], strides = [1, 1]} : vector<8x128xf32> to vector<8x32xf32>
    %383 = math.tanh %382 : vector<8x32xf32>
    %384 = arith.mulf %380, %361 : vector<8x32xf32>
    %385 = arith.mulf %379, %383 : vector<8x32xf32>
    %386 = arith.addf %384, %385 : vector<8x32xf32>
    %387 = math.tanh %386 : vector<8x32xf32>
    %388 = arith.mulf %381, %387 : vector<8x32xf32>
    %389 = arith.index_cast %367 : i32 to index
    %c0_114 = arith.constant 0 : index
    %390 = vector.load %arg8[%389, %c0_114] : memref<64x32xf32, #tpu.memory_space<vmem>>, vector<8x32xf32>
    tpu.vector_store %arg8[%389, %c0_114], %388 {strides = array<i32>} : memref<64x32xf32, #tpu.memory_space<vmem>>, vector<8x32xf32>,
    %c6_i32_115 = arith.constant 6 : i32
    %c8_i32_116 = arith.constant 8 : i32
    %391 = arith.muli %c6_i32_115, %c8_i32_116 : i32
    %392 = tpu.assume_multiple %391, 8 : i32
    %393 = arith.index_cast %392 : i32 to index
    %c0_117 = arith.constant 0 : index
    %394 = vector.load %arg9[%393, %c0_117] : memref<64x128xf32, #tpu.memory_space<vmem>>, vector<8x128xf32>
    %395 = arith.truncf %388 : vector<8x32xf32> to vector<8x32xbf16>
    %cst_118 = arith.constant dense<0.000000e+00> : vector<8x128xf32>
    %396 = tpu.matmul %395, %230, %cst_118 {dimension_numbers = #tpu.dot_dimension_numbers<[1], [0], [0], [1], [0, 0, 1, 1], [], []>} : vector<8x32xbf16>, vector<32x128xbf16>, vector<8x128xf32> -> vector<8x128xf32>
    %397 = arith.addf %394, %396 : vector<8x128xf32>
    %398 = vector.extract_strided_slice %397 {offsets = [0, 0], sizes = [8, 96], strides = [1, 1]} : vector<8x128xf32> to vector<8x96xf32>
    %399 = arith.negf %398 : vector<8x96xf32>
    %400 = math.exp %399 : vector<8x96xf32>
    %cst_119 = arith.constant 1.000000e+00 : f32
    %401 = vector.broadcast %cst_119 : f32 to vector<8x96xf32>
    %402 = arith.addf %401, %400 : vector<8x96xf32>
    %403 = arith.divf %401, %402 : vector<8x96xf32>
    %404 = vector.extract_strided_slice %403 {offsets = [0, 0], sizes = [8, 32], strides = [1, 1]} : vector<8x96xf32> to vector<8x32xf32>
    %405 = vector.extract_strided_slice %403 {offsets = [0, 32], sizes = [8, 32], strides = [1, 1]} : vector<8x96xf32> to vector<8x32xf32>
    %406 = vector.extract_strided_slice %403 {offsets = [0, 64], sizes = [8, 32], strides = [1, 1]} : vector<8x96xf32> to vector<8x32xf32>
    %407 = vector.extract_strided_slice %397 {offsets = [0, 96], sizes = [8, 32], strides = [1, 1]} : vector<8x128xf32> to vector<8x32xf32>
    %408 = math.tanh %407 : vector<8x32xf32>
    %409 = arith.mulf %405, %386 : vector<8x32xf32>
    %410 = arith.mulf %404, %408 : vector<8x32xf32>
    %411 = arith.addf %409, %410 : vector<8x32xf32>
    %412 = math.tanh %411 : vector<8x32xf32>
    %413 = arith.mulf %406, %412 : vector<8x32xf32>
    %414 = arith.index_cast %392 : i32 to index
    %c0_120 = arith.constant 0 : index
    %415 = vector.load %arg8[%414, %c0_120] : memref<64x32xf32, #tpu.memory_space<vmem>>, vector<8x32xf32>
    tpu.vector_store %arg8[%414, %c0_120], %413 {strides = array<i32>} : memref<64x32xf32, #tpu.memory_space<vmem>>, vector<8x32xf32>,
    %c7_i32_121 = arith.constant 7 : i32
    %c8_i32_122 = arith.constant 8 : i32
    %416 = arith.muli %c7_i32_121, %c8_i32_122 : i32
    %417 = tpu.assume_multiple %416, 8 : i32
    %418 = arith.index_cast %417 : i32 to index
    %c0_123 = arith.constant 0 : index
    %419 = vector.load %arg9[%418, %c0_123] : memref<64x128xf32, #tpu.memory_space<vmem>>, vector<8x128xf32>
    %420 = arith.truncf %413 : vector<8x32xf32> to vector<8x32xbf16>
    %cst_124 = arith.constant dense<0.000000e+00> : vector<8x128xf32>
    %421 = tpu.matmul %420, %230, %cst_124 {dimension_numbers = #tpu.dot_dimension_numbers<[1], [0], [0], [1], [0, 0, 1, 1], [], []>} : vector<8x32xbf16>, vector<32x128xbf16>, vector<8x128xf32> -> vector<8x128xf32>
    %422 = arith.addf %419, %421 : vector<8x128xf32>
    %423 = vector.extract_strided_slice %422 {offsets = [0, 0], sizes = [8, 96], strides = [1, 1]} : vector<8x128xf32> to vector<8x96xf32>
    %424 = arith.negf %423 : vector<8x96xf32>
    %425 = math.exp %424 : vector<8x96xf32>
    %cst_125 = arith.constant 1.000000e+00 : f32
    %426 = vector.broadcast %cst_125 : f32 to vector<8x96xf32>
    %427 = arith.addf %426, %425 : vector<8x96xf32>
    %428 = arith.divf %426, %427 : vector<8x96xf32>
    %429 = vector.extract_strided_slice %428 {offsets = [0, 0], sizes = [8, 32], strides = [1, 1]} : vector<8x96xf32> to vector<8x32xf32>
    %430 = vector.extract_strided_slice %428 {offsets = [0, 32], sizes = [8, 32], strides = [1, 1]} : vector<8x96xf32> to vector<8x32xf32>
    %431 = vector.extract_strided_slice %428 {offsets = [0, 64], sizes = [8, 32], strides = [1, 1]} : vector<8x96xf32> to vector<8x32xf32>
    %432 = vector.extract_strided_slice %422 {offsets = [0, 96], sizes = [8, 32], strides = [1, 1]} : vector<8x128xf32> to vector<8x32xf32>
    %433 = math.tanh %432 : vector<8x32xf32>
    %434 = arith.mulf %430, %411 : vector<8x32xf32>
    %435 = arith.mulf %429, %433 : vector<8x32xf32>
    %436 = arith.addf %434, %435 : vector<8x32xf32>
    %437 = math.tanh %436 : vector<8x32xf32>
    %438 = arith.mulf %431, %437 : vector<8x32xf32>
    %439 = arith.index_cast %417 : i32 to index
    %c0_126 = arith.constant 0 : index
    %440 = vector.load %arg8[%439, %c0_126] : memref<64x32xf32, #tpu.memory_space<vmem>>, vector<8x32xf32>
    tpu.vector_store %arg8[%439, %c0_126], %438 {strides = array<i32>} : memref<64x32xf32, #tpu.memory_space<vmem>>, vector<8x32xf32>,
    %c8_i32_127 = arith.constant 8 : i32
    %c1_128 = arith.constant 1 : index
    %c0_129 = arith.constant 0 : index
    %c0_130 = arith.constant 0 : index
    %441 = vector.load %arg11[%c1_128, %c0_129, %c0_130] : memref<2x8x32xf32, #tpu.memory_space<vmem>>, vector<1x8x32xf32>
    %442 = vector.shape_cast %441 : vector<1x8x32xf32> to vector<8x32xf32>
    %443 = vector.shape_cast %438 : vector<8x32xf32> to vector<1x8x32xf32>
    tpu.vector_store %arg11[%c1_128, %c0_129, %c0_130], %443 {strides = array<i32>} : memref<2x8x32xf32, #tpu.memory_space<vmem>>, vector<1x8x32xf32>,
    %c1_131 = arith.constant 1 : index
    %c0_132 = arith.constant 0 : index
    %c0_133 = arith.constant 0 : index
    %444 = vector.load %arg12[%c1_131, %c0_132, %c0_133] : memref<2x8x32xf32, #tpu.memory_space<vmem>>, vector<1x8x32xf32>
    %445 = vector.shape_cast %444 : vector<1x8x32xf32> to vector<8x32xf32>
    %446 = vector.shape_cast %436 : vector<8x32xf32> to vector<1x8x32xf32>
    tpu.vector_store %arg12[%c1_131, %c0_132, %c0_133], %446 {strides = array<i32>} : memref<2x8x32xf32, #tpu.memory_space<vmem>>, vector<1x8x32xf32>,
    return
  }
  func.func @transform_0(%arg0: i32) -> (i32, i32) {
    %c0_i32 = arith.constant 0 : i32
    %c0_i32_0 = arith.constant 0 : i32
    return %arg0, %c0_i32 : i32, i32
  }
  func.func @transform_1(%arg0: i32) -> (i32, i32) {
    %c0_i32 = arith.constant 0 : i32
    %c0_i32_0 = arith.constant 0 : i32
    %c0_i32_1 = arith.constant 0 : i32
    return %c0_i32, %c0_i32_0 : i32, i32
  }
  func.func @transform_2(%arg0: i32) -> (i32, i32) {
    %c0_i32 = arith.constant 0 : i32
    %c0_i32_0 = arith.constant 0 : i32
    %c0_i32_1 = arith.constant 0 : i32
    return %c0_i32, %c0_i32_0 : i32, i32
  }
  func.func @transform_3(%arg0: i32) -> (i32, i32) {
    %c0_i32 = arith.constant 0 : i32
    %c0_i32_0 = arith.constant 0 : i32
    %c0_i32_1 = arith.constant 0 : i32
    return %c0_i32, %c0_i32_0 : i32, i32
  }
  func.func @transform_4(%arg0: i32) -> (i32, i32) {
    %c0_i32 = arith.constant 0 : i32
    %c0_i32_0 = arith.constant 0 : i32
    %c0_i32_1 = arith.constant 0 : i32
    return %c0_i32, %c0_i32_0 : i32, i32
  }
  func.func @transform_5(%arg0: i32) -> (i32, i32) {
    %c0_i32 = arith.constant 0 : i32
    %c0_i32_0 = arith.constant 0 : i32
    %c0_i32_1 = arith.constant 0 : i32
    return %c0_i32, %c0_i32_0 : i32, i32
  }
  func.func @transform_6(%arg0: i32) -> (i32, i32) {
    %c0_i32 = arith.constant 0 : i32
    %c0_i32_0 = arith.constant 0 : i32
    %c0_i32_1 = arith.constant 0 : i32
    return %c0_i32, %c0_i32_0 : i32, i32
  }
  func.func @transform_7(%arg0: i32) -> (i32, i32) {
    %c0_i32 = arith.constant 0 : i32
    %c0_i32_0 = arith.constant 0 : i32
    return %arg0, %c0_i32 : i32, i32
  }
}

</mosaic_0001>

<bundles_post_ra>
// kernel: basic_rnn_forward.1
= control target key start
LH: loop header
LB: loop body
LE: loop exit
PB: predicated region body
PF: predicated region fallthrough
CT: control target
= control target key end

     0   :  { %vm31_vm0 = vcmask 261120   ;;  %v1607_v2 = vmov 0.0   ;;  %s1608_s11 = smov 32   ;;  %s1609_s12 = smov 64   ;;  %s1998_s1 = inlined_call_operand.vmem [shape: bf16[32,128], index: 1, kind: input, shape index: {}]   ;;  %s1999_s2 = inlined_call_operand.vmem [shape: bf16[32,128], index: 2, kind: input, shape index: {}]   ;;  %s2000_s3 = inlined_call_operand.vmem [shape: f32[1,128], index: 3, kind: input, shape index: {}]   ;;  %s2001_s0 = inlined_call_operand.vmem [shape: bf16[64,32], index: 0, kind: input, shape index: {}]   ;;  %s2002_s4 = inlined_call_operand.vmem [shape: bf16[32,128], index: 4, kind: input, shape index: {}]   ;;  %s2003_s6 = inlined_call_operand.vmem [shape: f32[1,128], index: 6, kind: input, shape index: {}]   ;;  %s2004_s5 = inlined_call_operand.vmem [shape: bf16[32,128], index: 5, kind: input, shape index: {}]   ;;  %s2005_s7 = inlined_call_operand.vmem [shape: f32[64,32], index: 7, kind: output, shape index: {}]  }
   0x1   :  { %v1457_v0 = vld [vmem:[%s1998_s1 + $0x8] sm:$0xff]  ;;  %32 = vst.msk [vmem:[#allocation4] sm:$0xff] %vm31_vm0, %v1607_v2  ;;  %v1456_v3 = vld [vmem:[%s1998_s1] sm:$0xff] }
   0x2   :  { %v1657_v1 = vld [vmem:[%s1999_s2 + $0x8] sm:$0xff]  ;;  %33 = vst.msk [vmem:[#allocation4 + $0x8] sm:$0xff] %vm31_vm0, %v1607_v2  ;;  %107 = vmatpush.bf16.msra.mxu0 %v1457_v0  ;;  %v1668_v4 = vld [vmem:[%s1999_s2] sm:$0xff] }
   0x3   :  { %163 = vmatpush.bf16.msra.mxu1 %v1657_v1  ;;  %34 = vst.msk [vmem:[#allocation5] sm:$0xff] %vm31_vm0, %v1607_v2  ;;  %234 = vmatpush.bf16.msra.mxu2 %v1657_v1  ;;  %v1460_v5 = vld [vmem:[%s2001_s0] sm:$0xff] }
   0x4   :  { %35 = vst.msk [vmem:[#allocation5 + $0x8] sm:$0xff] %vm31_vm0, %v1607_v2  ;;  %301 = vmatpush.bf16.msra.mxu3 %v1657_v1  ;;  %v1693_v8 = vld [vmem:[%s2000_s3] ss:$0 sm:$0xff] }
   0x6   :  { %108 = vmatpush.bf16.msra.mxu0 %v1456_v3  ;;  %v1461_v3 = vld [vmem:[%s2001_s0 + $0x8] sm:$0xff] }
   0x7   :  { %164 = vmatpush.bf16.msra.mxu1 %v1668_v4  ;;  %235 = vmatpush.bf16.msra.mxu2 %v1668_v4 }
   0x8   :  { %v138_v6 = vld [vmem:[#allocation4] sm:$0xff]  ;;  %302 = vmatpush.bf16.msra.mxu3 %v1668_v4 }
   0x9   :  { %v141_v7 = vpack.c.bf16 %v138_v6, %v138_v6  ;;  %1369 = vmatmul.msk.bf16.vlgmr.msra.gmra.mxu0 %vm31_vm0, %v1460_v5 }
   0xa   :  { %v139_v15 = vld [vmem:[#allocation5] sm:$0xff] }
   0xb   :  { %368 = vmatpush.bf16.msrb.mxu1 %v1657_v1  ;;  %435 = vmatpush.bf16.msrb.mxu2 %v1657_v1 }
   0xc   :  { %502 = vmatpush.bf16.msrb.mxu3 %v1657_v1  ;;  %1381 = vmatmul.msk.bf16.vlgmr.msra.gmra.mxu1 %vm31_vm0, %v141_v7 }
   0xf   :  { %369 = vmatpush.bf16.msrb.mxu1 %v1668_v4  ;;  %436 = vmatpush.bf16.msrb.mxu2 %v1668_v4 }
  0x10   :  { %503 = vmatpush.bf16.msrb.mxu3 %v1668_v4 }
  0x13   :  { %569 = vmatpush.bf16.msra.mxu1 %v1657_v1 }
  0x17   :  { %570 = vmatpush.bf16.msra.mxu1 %v1668_v4 }
  0x19   :  { %1370 = vmatmul.msk.bf16.gmra.mxu0 %vm31_vm0, %v1461_v3 }
  0x86   :  { %v110_v9 = vpop.f32.mrf.mxu0 }
  0x87   :  { %v111_v10 = vadd.f32 %v1693_v8, %v110_v9 }
  0x89   :  { %v166_v11 = vpop.f32.mrf.mxu1 }
  0x8a   :  { %v170_v12 = vadd.f32 %v166_v11, %v111_v10 }
  0x8c   :  { %1478 = vtanh.f32 %v170_v12  ;;  %v1382_v16 = vmul.f32 -1.442695, %v170_v12 }
  0x8e   :  { %1480 = vpow2.f32 %v1382_v16  ;;  %v112_v42 = vpop.f32.mrf.mxu0 }
  0x8f   :  { %v113_v43 = vadd.f32 %v1693_v8, %v112_v42 }
  0x91   :  { %v168_v13 = vpop.f32.mrf.mxu1 }
  0x92   :  { %v1479_v14 = vpop.eup %1478 }
  0x93   :  { %197 = vrot.lane.b32.xlu0 %v1479_v14, %s1608_s11 }
  0x94   :  { %v1481_v17 = vpop.eup %1480 }
  0x95   :  { %v174_v18 = vadd.f32 1.0, %v1481_v17 }
  0x96   :  { %v115_v11 = vpop.f32.mrf.mxu0 }
  0x97   :  { %1482 = vrcp.f32 %v174_v18  ;;  %v186_v24 = vand.u32 2147483648, %v174_v18  ;;  %vm180_vm2 = vweird.f32 %v174_v18  ;;  %v184_v25 = vand.u32 2147483647, %v174_v18 }
  0x98   :  { %v116_v12 = vadd.f32 %v1693_v8, %v115_v11 }
  0x99   :  { %v187_v27 = vor.u32 1.1754944e-38, %v186_v24  ;;  %vm185_vm4 = vcmp.eq.f32.partialorder %v184_v25, 8.507059e+37 }
  0x9b   :  { %192 = vrot.lane.b32.xlu0 %v139_v15, %s1608_s11 }
  0x9d   :  { %v1483_v19 = vpop.eup %1482 }
  0x9e   :  { %v176_v20 = vmul.f32 %v1483_v19, %v174_v18  ;;  %vm181_vm1 = vweird.f32 %v1483_v19 }
  0x9f   :  { %vm182_vm3 = vmor %vm180_vm2, %vm181_vm1 }
  0xa0   :  { %v177_v21 = vsub.f32 1.0, %v176_v20 }
  0xa2   :  { %v178_v22 = vmul.f32 %v1483_v19, %v177_v21 }
  0xa4   :  { %v179_v23 = vadd.f32 %v1483_v19, %v178_v22 }
  0xa6   :  { %v183_v26 = vsel %vm182_vm3, %v1483_v19, %v179_v23 }
  0xa7   :  { %v188_v29 = vsel %vm185_vm4, %v187_v27, %v183_v26 }
 0x105   :  { %v198_v28 = vpop.permute.xlu0 %197 }
 0x106   :  { %v200_v30 = vmul.f32 %v198_v28, %v188_v29 }
 0x108   :  { %202 = vrot.lane.b32.xlu1 %v200_v30, %s1608_s11 }
 0x10d   :  { %v193_v31 = vpop.permute.xlu0 %192 }
 0x10e   :  { %v195_v32 = vmul.f32 %v193_v31, %v188_v29 }
 0x17a   :  { %v203_v33 = vpop.permute.xlu1 %202 }
 0x17b   :  { %v205_v34 = vadd.f32 %v203_v33, %v195_v32 }
 0x17d   :  { %1484 = vtanh.f32 %v205_v34 }
 0x183   :  { %v1485_v35 = vpop.eup %1484 }
 0x184   :  { %208 = vrot.lane.b32.xlu1 %v1485_v35, %s1608_s11 }
 0x1f6   :  { %v209_v36 = vpop.permute.xlu1 %208 }
 0x1f7   :  { %v211_v37 = vmul.f32 %v209_v36, %v188_v29 }
 0x1f9   :  { %v1700_v38 = vpack.c.bf16 %v211_v37, %v211_v37 }
 0x1fb   :  { %v221_v39 = vunpack.c.l.b16 %v1700_v38 }
 0x1fd   :  { %v222_v40 = vpack.c.b16 %v221_v39, %v221_v39 }
 0x1ff   :  { %223 = vrot.lane.b32.xlu2 %v222_v40, %s1609_s12 }
 0x259   :  { %v224_v41 = vpop.permute.xlu2 %223 }
 0x25a   :  { %1383 = vmatmul.msk.bf16.vlgmr.msra.gmra.mxu2 %vm31_vm0, %v224_v41 }
 0x25b   :  { %636 = vmatpush.bf16.msra.mxu2 %v1657_v1 }
 0x25f   :  { %637 = vmatpush.bf16.msra.mxu2 %v1668_v4 }
 0x2dd   :  { %v237_v44 = vpop.f32.mrf.mxu2 }
 0x2de   :  { %v241_v45 = vadd.f32 %v237_v44, %v113_v43  ;;  %v117_v43 = vpop.f32.mrf.mxu0 }
 0x2df   :  { %v118_v44 = vadd.f32 %v1693_v8, %v117_v43 }
 0x2e0   :  { %1486 = vtanh.f32 %v241_v45  ;;  %v1384_v48 = vmul.f32 -1.442695, %v241_v45 }
 0x2e2   :  { %1488 = vpow2.f32 %v1384_v48 }
 0x2e5   :  { %v239_v46 = vpop.f32.mrf.mxu2 }
 0x2e6   :  { %v1487_v47 = vpop.eup %1486 }
 0x2e7   :  { %264 = vrot.lane.b32.xlu2 %v1487_v47, %s1608_s11 }
 0x2e8   :  { %v1489_v49 = vpop.eup %1488 }
 0x2e9   :  { %v245_v50 = vadd.f32 1.0, %v1489_v49 }
 0x2eb   :  { %1490 = vrcp.f32 %v245_v50  ;;  %v257_v56 = vand.u32 2147483648, %v245_v50  ;;  %vm251_vm6 = vweird.f32 %v245_v50  ;;  %v255_v57 = vand.u32 2147483647, %v245_v50 }
 0x2ed   :  { %v258_v59 = vor.u32 1.1754944e-38, %v257_v56  ;;  %vm256_vm8 = vcmp.eq.f32.partialorder %v255_v57, 8.507059e+37 }
 0x2f1   :  { %v1491_v51 = vpop.eup %1490 }
 0x2f2   :  { %v247_v52 = vmul.f32 %v1491_v51, %v245_v50  ;;  %vm252_vm5 = vweird.f32 %v1491_v51 }
 0x2f3   :  { %vm253_vm7 = vmor %vm251_vm6, %vm252_vm5 }
 0x2f4   :  { %v248_v53 = vsub.f32 1.0, %v247_v52 }
 0x2f6   :  { %v249_v54 = vmul.f32 %v1491_v51, %v248_v53 }
 0x2f8   :  { %v250_v55 = vadd.f32 %v1491_v51, %v249_v54 }
 0x2fa   :  { %v254_v58 = vsel %vm253_vm7, %v1491_v51, %v250_v55 }
 0x2fb   :  { %v259_v61 = vsel %vm256_vm8, %v258_v59, %v254_v58 }
 0x2fc   :  { %v262_v63 = vmul.f32 %v259_v61, %v205_v34 }
 0x341   :  { %v265_v60 = vpop.permute.xlu2 %264 }
 0x342   :  { %v267_v62 = vmul.f32 %v265_v60, %v259_v61 }
 0x344   :  { %269 = vrot.lane.b32.xlu0 %v267_v62, %s1608_s11 }
 0x3b6   :  { %v270_v0 = vpop.permute.xlu0 %269 }
 0x3b7   :  { %v272_v1 = vadd.f32 %v270_v0, %v262_v63 }
 0x3b9   :  { %1492 = vtanh.f32 %v272_v1 }
 0x3bf   :  { %v1493_v2 = vpop.eup %1492 }
 0x3c0   :  { %275 = vrot.lane.b32.xlu1 %v1493_v2, %s1608_s11 }
 0x432   :  { %v276_v4 = vpop.permute.xlu1 %275 }
 0x433   :  { %v278_v5 = vmul.f32 %v276_v4, %v259_v61  ;;  %v1462_v4 = vld [vmem:[%s2001_s0 + $0x10] sm:$0xff] }
 0x434   :  { %1371 = vmatmul.msk.bf16.gmra.mxu0 %vm31_vm0, %v1462_v4 }
 0x435   :  { %v1715_v6 = vpack.c.bf16 %v278_v5, %v278_v5 }
 0x437   :  { %v288_v7 = vunpack.c.l.b16 %v1715_v6 }
 0x439   :  { %v289_v9 = vpack.c.b16 %v288_v7, %v288_v7 }
 0x43b   :  { %290 = vrot.lane.b32.xlu2 %v289_v9, %s1609_s12 }
 0x495   :  { %v291_v10 = vpop.permute.xlu2 %290 }
 0x496   :  { %1385 = vmatmul.msk.bf16.vlgmr.msra.gmra.mxu3 %vm31_vm0, %v291_v10 }
 0x519   :  { %v304_v13 = vpop.f32.mrf.mxu3 }
 0x51a   :  { %v308_v14 = vadd.f32 %v304_v13, %v116_v12  ;;  %v120_v13 = vpop.f32.mrf.mxu0 }
 0x51c   :  { %1494 = vtanh.f32 %v308_v14  ;;  %v1386_v17 = vmul.f32 -1.442695, %v308_v14  ;;  %v121_v14 = vadd.f32 %v1693_v8, %v120_v13 }
 0x51e   :  { %1496 = vpow2.f32 %v1386_v17 }
 0x521   :  { %v306_v15 = vpop.f32.mrf.mxu3 }
 0x522   :  { %v1495_v16 = vpop.eup %1494 }
 0x523   :  { %331 = vrot.lane.b32.xlu0 %v1495_v16, %s1608_s11 }
 0x524   :  { %v1497_v18 = vpop.eup %1496 }
 0x525   :  { %v312_v19 = vadd.f32 1.0, %v1497_v18 }
 0x527   :  { %1498 = vrcp.f32 %v312_v19  ;;  %v324_v25 = vand.u32 2147483648, %v312_v19  ;;  %vm318_vm10 = vweird.f32 %v312_v19  ;;  %v322_v26 = vand.u32 2147483647, %v312_v19 }
 0x529   :  { %v325_v28 = vor.u32 1.1754944e-38, %v324_v25  ;;  %vm323_vm12 = vcmp.eq.f32.partialorder %v322_v26, 8.507059e+37 }
 0x52d   :  { %v1499_v20 = vpop.eup %1498 }
 0x52e   :  { %v314_v21 = vmul.f32 %v1499_v20, %v312_v19  ;;  %vm319_vm9 = vweird.f32 %v1499_v20 }
 0x52f   :  { %vm320_vm11 = vmor %vm318_vm10, %vm319_vm9  ;;  %vm217_vm10 = vcmask 257024  }
 0x530   :  { %v315_v22 = vsub.f32 1.0, %v314_v21 }
 0x532   :  { %v316_v23 = vmul.f32 %v1499_v20, %v315_v22 }
 0x534   :  { %v317_v24 = vadd.f32 %v1499_v20, %v316_v23 }
 0x536   :  { %v321_v27 = vsel %vm320_vm11, %v1499_v20, %v317_v24 }
 0x537   :  { %v326_v30 = vsel %vm323_vm12, %v325_v28, %v321_v27 }
 0x538   :  { %v329_v32 = vmul.f32 %v326_v30, %v272_v1 }
 0x595   :  { %v332_v29 = vpop.permute.xlu0 %331 }
 0x596   :  { %v334_v31 = vmul.f32 %v332_v29, %v326_v30 }
 0x598   :  { %336 = vrot.lane.b32.xlu1 %v334_v31, %s1608_s11 }
 0x60a   :  { %v337_v33 = vpop.permute.xlu1 %336 }
 0x60b   :  { %v339_v34 = vadd.f32 %v337_v33, %v329_v32 }
 0x60d   :  { %1500 = vtanh.f32 %v339_v34 }
 0x613   :  { %v1501_v35 = vpop.eup %1500 }
 0x614   :  { %342 = vrot.lane.b32.xlu2 %v1501_v35, %s1608_s11 }
 0x66e   :  { %v343_v36 = vpop.permute.xlu2 %342 }
 0x66f   :  { %v345_v37 = vmul.f32 %v343_v36, %v326_v30 }
 0x671   :  { %v1724_v39 = vpack.c.bf16 %v345_v37, %v345_v37 }
 0x673   :  { %v355_v40 = vunpack.c.l.b16 %v1724_v39 }
 0x675   :  { %v356_v41 = vpack.c.b16 %v355_v40, %v355_v40 }
 0x677   :  { %357 = vrot.lane.b32.xlu0 %v356_v41, %s1609_s12 }
 0x6e9   :  { %v358_v42 = vpop.permute.xlu0 %357 }
 0x6ea   :  { %1387 = vmatmul.msk.bf16.vlgmr.msrb.gmra.mxu1 %vm31_vm0, %v358_v42 }
 0x767   :  { %v371_v45 = vpop.f32.mrf.mxu1 }
 0x768   :  { %v375_v46 = vadd.f32 %v371_v45, %v118_v44 }
 0x76a   :  { %1502 = vtanh.f32 %v375_v46  ;;  %v1388_v49 = vmul.f32 -1.442695, %v375_v46  ;;  %v122_v46 = vpop.f32.mrf.mxu0 }
 0x76c   :  { %1504 = vpow2.f32 %v1388_v49 }
 0x76f   :  { %v373_v47 = vpop.f32.mrf.mxu1 }
 0x770   :  { %v1503_v48 = vpop.eup %1502  ;;  %v123_v47 = vadd.f32 %v1693_v8, %v122_v46 }
 0x771   :  { %398 = vrot.lane.b32.xlu1 %v1503_v48, %s1608_s11 }
 0x772   :  { %v1505_v50 = vpop.eup %1504 }
 0x773   :  { %v379_v51 = vadd.f32 1.0, %v1505_v50 }
 0x775   :  { %1506 = vrcp.f32 %v379_v51  ;;  %v391_v57 = vand.u32 2147483648, %v379_v51  ;;  %vm385_vm14 = vweird.f32 %v379_v51  ;;  %v389_v58 = vand.u32 2147483647, %v379_v51 }
 0x777   :  { %v392_v60 = vor.u32 1.1754944e-38, %v391_v57  ;;  %vm390_vm1 = vcmp.eq.f32.partialorder %v389_v58, 8.507059e+37 }
 0x77b   :  { %v1507_v52 = vpop.eup %1506 }
 0x77c   :  { %v381_v53 = vmul.f32 %v1507_v52, %v379_v51  ;;  %vm386_vm13 = vweird.f32 %v1507_v52 }
 0x77d   :  { %vm387_vm15 = vmor %vm385_vm14, %vm386_vm13 }
 0x77e   :  { %v382_v54 = vsub.f32 1.0, %v381_v53 }
 0x780   :  { %v383_v55 = vmul.f32 %v1507_v52, %v382_v54 }
 0x782   :  { %v384_v56 = vadd.f32 %v1507_v52, %v383_v55 }
 0x784   :  { %v388_v59 = vsel %vm387_vm15, %v1507_v52, %v384_v56 }
 0x785   :  { %v393_v62 = vsel %vm390_vm1, %v392_v60, %v388_v59 }
 0x786   :  { %v396_v0 = vmul.f32 %v393_v62, %v339_v34 }
 0x7e3   :  { %v399_v61 = vpop.permute.xlu1 %398 }
 0x7e4   :  { %v401_v63 = vmul.f32 %v399_v61, %v393_v62 }
 0x7e6   :  { %403 = vrot.lane.b32.xlu2 %v401_v63, %s1608_s11 }
 0x840   :  { %v404_v1 = vpop.permute.xlu2 %403 }
 0x841   :  { %v406_v2 = vadd.f32 %v404_v1, %v396_v0 }
 0x843   :  { %1508 = vtanh.f32 %v406_v2 }
 0x849   :  { %v1509_v3 = vpop.eup %1508 }
 0x84a   :  { %409 = vrot.lane.b32.xlu0 %v1509_v3, %s1608_s11 }
 0x8bc   :  { %v410_v5 = vpop.permute.xlu0 %409 }
 0x8bd   :  { %v412_v7 = vmul.f32 %v410_v5, %v393_v62 }
 0x8bf   :  { %v1737_v9 = vpack.c.bf16 %v412_v7, %v412_v7 }
 0x8c1   :  { %v422_v10 = vunpack.c.l.b16 %v1737_v9 }
 0x8c3   :  { %v423_v11 = vpack.c.b16 %v422_v10, %v422_v10 }
 0x8c5   :  { %424 = vrot.lane.b32.xlu1 %v423_v11, %s1609_s12  ;;  %v1464_v11 = vld [vmem:[%s2002_s4] sm:$0xff] }
 0x937   :  { %v425_v12 = vpop.permute.xlu1 %424 }
 0x938   :  { %1389 = vmatmul.msk.bf16.vlgmr.msrb.gmra.mxu2 %vm31_vm0, %v425_v12  ;;  %v1463_v12 = vld [vmem:[%s2001_s0 + $0x18] sm:$0xff] }
 0x939   :  { %1372 = vmatmul.msk.bf16.gmra.mxu0 %vm31_vm0, %v1463_v12 }
 0x9bb   :  { %v438_v15 = vpop.f32.mrf.mxu2 }
 0x9bc   :  { %v442_v16 = vadd.f32 %v438_v15, %v121_v14 }
 0x9be   :  { %1510 = vtanh.f32 %v442_v16  ;;  %v1390_v19 = vmul.f32 -1.442695, %v442_v16 }
 0x9c0   :  { %1512 = vpow2.f32 %v1390_v19  ;;  %v1782_v19 = vld [vmem:[%s2004_s5 + $0x8] sm:$0xff] }
 0x9c1   :  { %826 = vmatpush.bf16.msrb.mxu1 %v1782_v19  ;;  %894 = vmatpush.bf16.msrb.mxu2 %v1782_v19 }
 0x9c2   :  { %959 = vmatpush.bf16.msrb.mxu0 %v1782_v19 }
 0x9c3   :  { %v440_v17 = vpop.f32.mrf.mxu2 }
 0x9c4   :  { %v1511_v18 = vpop.eup %1510 }
 0x9c5   :  { %465 = vrot.lane.b32.xlu2 %v1511_v18, %s1608_s11 }
 0x9c6   :  { %v1513_v20 = vpop.eup %1512 }
 0x9c7   :  { %v446_v21 = vadd.f32 1.0, %v1513_v20  ;;  %v1788_v20 = vld [vmem:[%s2004_s5] sm:$0xff] }
 0x9c8   :  { %827 = vmatpush.bf16.msrb.mxu1 %v1788_v20  ;;  %895 = vmatpush.bf16.msrb.mxu2 %v1788_v20 }
 0x9c9   :  { %1514 = vrcp.f32 %v446_v21  ;;  %v458_v27 = vand.u32 2147483648, %v446_v21  ;;  %vm452_vm3 = vweird.f32 %v446_v21  ;;  %v456_v28 = vand.u32 2147483647, %v446_v21  ;;  %960 = vmatpush.bf16.msrb.mxu0 %v1788_v20 }
 0x9cb   :  { %v459_v30 = vor.u32 1.1754944e-38, %v458_v27  ;;  %vm457_vm5 = vcmp.eq.f32.partialorder %v456_v28, 8.507059e+37 }
 0x9cd   :  { %1154 = vmatpush.bf16.msra.mxu0 %v1782_v19 }
 0x9cf   :  { %v1515_v22 = vpop.eup %1514 }
 0x9d0   :  { %v448_v23 = vmul.f32 %v1515_v22, %v446_v21  ;;  %vm453_vm2 = vweird.f32 %v1515_v22 }
 0x9d1   :  { %vm454_vm4 = vmor %vm452_vm3, %vm453_vm2  ;;  %1155 = vmatpush.bf16.msra.mxu0 %v1788_v20 }
 0x9d2   :  { %v449_v24 = vsub.f32 1.0, %v448_v23 }
 0x9d4   :  { %v450_v25 = vmul.f32 %v1515_v22, %v449_v24  ;;  %v125_v24 = vpop.f32.mrf.mxu0 }
 0x9d6   :  { %v451_v26 = vadd.f32 %v1515_v22, %v450_v25  ;;  %v126_v25 = vadd.f32 %v1693_v8, %v125_v24 }
 0x9d8   :  { %v455_v29 = vsel %vm454_vm4, %v1515_v22, %v451_v26  ;;  %v800_v22 = vld [vmem:[#allocation4 + $0x8] sm:$0xff] }
 0x9d9   :  { %v460_v32 = vsel %vm457_vm5, %v459_v30, %v455_v29  ;;  %v804_v23 = vpack.c.bf16 %v800_v22, %v800_v22  ;;  %v1808_v30 = vld [vmem:[%s2003_s6] ss:$0 sm:$0xff] }
 0x9da   :  { %v463_v34 = vmul.f32 %v460_v32, %v406_v2 }
 0xa1f   :  { %v466_v31 = vpop.permute.xlu2 %465 }
 0xa20   :  { %v468_v33 = vmul.f32 %v466_v31, %v460_v32 }
 0xa22   :  { %470 = vrot.lane.b32.xlu0 %v468_v33, %s1608_s11  ;;  %v802_v33 = vld [vmem:[#allocation5 + $0x8] sm:$0xff] }
 0xa94   :  { %v471_v35 = vpop.permute.xlu0 %470 }
 0xa95   :  { %v473_v36 = vadd.f32 %v471_v35, %v463_v34 }
 0xa97   :  { %1516 = vtanh.f32 %v473_v36 }
 0xa9d   :  { %v1517_v37 = vpop.eup %1516 }
 0xa9e   :  { %476 = vrot.lane.b32.xlu1 %v1517_v37, %s1608_s11 }
 0xb10   :  { %v477_v40 = vpop.permute.xlu1 %476 }
 0xb11   :  { %v479_v41 = vmul.f32 %v477_v40, %v460_v32 }
 0xb13   :  { %v1746_v42 = vpack.c.bf16 %v479_v41, %v479_v41 }
 0xb15   :  { %v489_v43 = vunpack.c.l.b16 %v1746_v42 }
 0xb17   :  { %v490_v44 = vpack.c.b16 %v489_v43, %v489_v43 }
 0xb19   :  { %491 = vrot.lane.b32.xlu2 %v490_v44, %s1609_s12 }
 0xb73   :  { %v492_v45 = vpop.permute.xlu2 %491 }
 0xb74   :  { %1391 = vmatmul.msk.bf16.vlgmr.msrb.gmra.mxu3 %vm31_vm0, %v492_v45 }
 0xbf7   :  { %v505_v48 = vpop.f32.mrf.mxu3 }
 0xbf8   :  { %v509_v49 = vadd.f32 %v505_v48, %v123_v47 }
 0xbfa   :  { %1518 = vtanh.f32 %v509_v49  ;;  %v1392_v52 = vmul.f32 -1.442695, %v509_v49 }
 0xbfc   :  { %1520 = vpow2.f32 %v1392_v52 }
 0xbff   :  { %v507_v50 = vpop.f32.mrf.mxu3 }
 0xc00   :  { %v1519_v51 = vpop.eup %1518 }
 0xc01   :  { %532 = vrot.lane.b32.xlu0 %v1519_v51, %s1608_s11 }
 0xc02   :  { %v1521_v53 = vpop.eup %1520 }
 0xc03   :  { %v513_v54 = vadd.f32 1.0, %v1521_v53 }
 0xc05   :  { %1522 = vrcp.f32 %v513_v54  ;;  %v525_v60 = vand.u32 2147483648, %v513_v54  ;;  %vm519_vm7 = vweird.f32 %v513_v54  ;;  %v523_v61 = vand.u32 2147483647, %v513_v54 }
 0xc07   :  { %v526_v63 = vor.u32 1.1754944e-38, %v525_v60  ;;  %vm524_vm9 = vcmp.eq.f32.partialorder %v523_v61, 8.507059e+37 }
 0xc0b   :  { %v1523_v55 = vpop.eup %1522 }
 0xc0c   :  { %v515_v56 = vmul.f32 %v1523_v55, %v513_v54  ;;  %vm520_vm6 = vweird.f32 %v1523_v55 }
 0xc0d   :  { %vm521_vm8 = vmor %vm519_vm7, %vm520_vm6 }
 0xc0e   :  { %v516_v57 = vsub.f32 1.0, %v515_v56 }
 0xc10   :  { %v517_v58 = vmul.f32 %v1523_v55, %v516_v57 }
 0xc12   :  { %v518_v59 = vadd.f32 %v1523_v55, %v517_v58 }
 0xc14   :  { %v522_v62 = vsel %vm521_vm8, %v1523_v55, %v518_v59 }
 0xc15   :  { %v527_v1 = vsel %vm524_vm9, %v526_v63, %v522_v62 }
 0xc16   :  { %v530_v3 = vmul.f32 %v527_v1, %v473_v36 }
 0xc73   :  { %v533_v0 = vpop.permute.xlu0 %532 }
 0xc74   :  { %v535_v2 = vmul.f32 %v533_v0, %v527_v1 }
 0xc76   :  { %537 = vrot.lane.b32.xlu1 %v535_v2, %s1608_s11 }
 0xc7e   :  { %214 = vrot.lane.b32.xlu1 %v1700_v38, %s1609_s12  ;;  %v1465_v38 = vld [vmem:[%s2002_s4 + $0x8] sm:$0xff] }
 0xc7f   :  { %768 = vmatpush.bf16.msra.mxu3 %v1465_v38 }
 0xc83   :  { %769 = vmatpush.bf16.msra.mxu3 %v1464_v11 }
 0xce8   :  { %v538_v4 = vpop.permute.xlu1 %537 }
 0xce9   :  { %v1756_v5 = vadd.f32 %v538_v4, %v530_v3 }
 0xceb   :  { %1524 = vtanh.f32 %v1756_v5 }
 0xcf0   :  { %v215_v7 = vpop.permute.xlu1 %214 }
 0xcf1   :  { %v1525_v10 = vpop.eup %1524  ;;  %218 = vst.msk [vmem:[#allocation3] sm:$0xf] %vm217_vm10, %v215_v7 }
 0xcf2   :  { %543 = vrot.lane.b32.xlu2 %v1525_v10, %s1608_s11 }
 0xcfa   :  { %281 = vrot.lane.b32.xlu2 %v1715_v6, %s1609_s12 }
 0xd4c   :  { %v544_v13 = vpop.permute.xlu2 %543 }
 0xd4d   :  { %v546_v14 = vmul.f32 %v544_v13, %v527_v1 }
 0xd4f   :  { %v1773_v15 = vpack.c.bf16 %v546_v14, %v546_v14 }
 0xd51   :  { %v556_v6 = vunpack.c.l.b16 %v1773_v15 }
 0xd53   :  { %v557_v16 = vpack.c.b16 %v556_v6, %v556_v6 }
 0xd54   :  { %v282_v17 = vpop.permute.xlu2 %281 }
 0xd55   :  { %285 = vst.msk [vmem:[#allocation3 + $0x4] sm:$0xf] %vm217_vm10, %v282_v17  ;;  %558 = vrot.lane.b32.xlu0 %v557_v16, %s1609_s12 }
 0xd5c   :  { %v1468_v18 = vld [vmem:[#allocation3] sm:$0xff] }
 0xd5d   :  { %1421 = vmatmul.msk.bf16.vlgmr.msra.gmra.mxu3 %vm31_vm0, %v1468_v18 }
 0xdc7   :  { %v559_v21 = vpop.permute.xlu0 %558 }
 0xdc8   :  { %1393 = vmatmul.msk.bf16.vlgmr.msra.gmra.mxu1 %vm31_vm0, %v559_v21 }
 0xdc9   :  { %1024 = vmatpush.bf16.msra.mxu1 %v1782_v19 }
 0xdcd   :  { %1025 = vmatpush.bf16.msra.mxu1 %v1788_v20 }
 0xdd8   :  { %1433 = vmatmul.msk.bf16.vlgmr.msrb.gmra.mxu1 %vm31_vm0, %v804_v23 }
 0xdd9   :  { %1219 = vmatpush.bf16.msrb.mxu1 %v1782_v19 }
 0xddd   :  { %1220 = vmatpush.bf16.msrb.mxu1 %v1788_v20 }
 0xde0   :  { %v771_v31 = vpop.f32.mrf.mxu3 }
 0xde1   :  { %v772_v32 = vadd.f32 %v1808_v30, %v771_v31 }
 0xe45   :  { %v572_v26 = vpop.f32.mrf.mxu1 }
 0xe46   :  { %v576_v27 = vadd.f32 %v572_v26, %v126_v25 }
 0xe48   :  { %1526 = vtanh.f32 %v576_v27  ;;  %v1394_v37 = vmul.f32 -1.442695, %v576_v27 }
 0xe4d   :  { %v574_v28 = vpop.f32.mrf.mxu1 }
 0xe4e   :  { %v1527_v29 = vpop.eup %1526 }
 0xe4f   :  { %599 = vrot.lane.b32.xlu0 %v1527_v29, %s1608_s11 }
 0xe55   :  { %v829_v34 = vpop.f32.mrf.mxu1 }
 0xe56   :  { %v833_v35 = vadd.f32 %v829_v34, %v772_v32  ;;  %v773_v32 = vpop.f32.mrf.mxu3 }
 0xe57   :  { %855 = vrot.lane.b32.xlu0 %v802_v33, %s1608_s11  ;;  %v774_v33 = vadd.f32 %v1808_v30, %v773_v32 }
 0xe58   :  { %1528 = vtanh.f32 %v833_v35  ;;  %v1434_v43 = vmul.f32 -1.442695, %v833_v35 }
 0xe59   :  { %1530 = vpow2.f32 %v1394_v37 }
 0xe5d   :  { %v831_v8 = vpop.f32.mrf.mxu1 }
 0xe5e   :  { %v1529_v36 = vpop.eup %1528 }
 0xe5f   :  { %860 = vrot.lane.b32.xlu1 %v1529_v36, %s1608_s11  ;;  %v1531_v40 = vpop.eup %1530 }
 0xe60   :  { %v580_v41 = vadd.f32 1.0, %v1531_v40 }
 0xe62   :  { %1532 = vrcp.f32 %v580_v41  ;;  %v592_v52 = vand.u32 2147483648, %v580_v41  ;;  %vm586_vm12 = vweird.f32 %v580_v41  ;;  %v590_v53 = vand.u32 2147483647, %v580_v41 }
 0xe63   :  { %1534 = vpow2.f32 %v1434_v43 }
 0xe64   :  { %v593_v56 = vor.u32 1.1754944e-38, %v592_v52  ;;  %vm591_vm14 = vcmp.eq.f32.partialorder %v590_v53, 8.507059e+37 }
 0xe68   :  { %v1533_v44 = vpop.eup %1532 }
 0xe69   :  { %v1535_v45 = vpop.eup %1534  ;;  %v582_v46 = vmul.f32 %v1533_v44, %v580_v41  ;;  %vm587_vm11 = vweird.f32 %v1533_v44 }
 0xe6a   :  { %v837_v47 = vadd.f32 1.0, %v1535_v45  ;;  %vm588_vm13 = vmor %vm586_vm12, %vm587_vm11 }
 0xe6b   :  { %v583_v48 = vsub.f32 1.0, %v582_v46 }
 0xe6c   :  { %1536 = vrcp.f32 %v837_v47  ;;  %v849_v63 = vand.u32 2147483648, %v837_v47  ;;  %vm843_vm1 = vweird.f32 %v837_v47  ;;  %v847_v0 = vand.u32 2147483647, %v837_v47 }
 0xe6d   :  { %v584_v49 = vmul.f32 %v1533_v44, %v583_v48 }
 0xe6e   :  { %v850_v2 = vor.u32 1.1754944e-38, %v849_v63  ;;  %vm848_vm3 = vcmp.eq.f32.partialorder %v847_v0, 8.507059e+37 }
 0xe6f   :  { %v585_v50 = vadd.f32 %v1533_v44, %v584_v49 }
 0xe71   :  { %v589_v54 = vsel %vm588_vm13, %v1533_v44, %v585_v50 }
 0xe72   :  { %v1537_v51 = vpop.eup %1536  ;;  %v594_v58 = vsel %vm591_vm14, %v593_v56, %v589_v54 }
 0xe73   :  { %v839_v55 = vmul.f32 %v1537_v51, %v837_v47  ;;  %vm844_vm15 = vweird.f32 %v1537_v51  ;;  %v597_v10 = vmul.f32 %v594_v58, %v1756_v5 }
 0xe74   :  { %vm845_vm2 = vmor %vm843_vm1, %vm844_vm15 }
 0xe75   :  { %v840_v60 = vsub.f32 1.0, %v839_v55 }
 0xe77   :  { %v841_v61 = vmul.f32 %v1537_v51, %v840_v60 }
 0xe79   :  { %v842_v62 = vadd.f32 %v1537_v51, %v841_v61 }
 0xe7b   :  { %v846_v1 = vsel %vm845_vm2, %v1537_v51, %v842_v62  ;;  %v1855_v62 = vpop.f32.mrf.mxu0 }
 0xe7c   :  { %v851_v3 = vsel %vm848_vm3, %v850_v2, %v846_v1 }
 0xec1   :  { %v600_v57 = vpop.permute.xlu0 %599 }
 0xec2   :  { %v602_v59 = vmul.f32 %v600_v57, %v594_v58 }
 0xec4   :  { %604 = vrot.lane.b32.xlu2 %v602_v59, %s1608_s11 }
 0xec9   :  { %v856_v13 = vpop.permute.xlu0 %855 }
 0xeca   :  { %v858_v14 = vmul.f32 %v856_v13, %v851_v3 }
 0xed1   :  { %v861_v4 = vpop.permute.xlu1 %860 }
 0xed2   :  { %v863_v7 = vmul.f32 %v861_v4, %v851_v3 }
 0xed4   :  { %865 = vrot.lane.b32.xlu1 %v863_v7, %s1608_s11 }
 0xf1e   :  { %v605_v38 = vpop.permute.xlu2 %604 }
 0xf1f   :  { %v1816_v11 = vadd.f32 %v605_v38, %v597_v10 }
 0xf21   :  { %1538 = vtanh.f32 %v1816_v11 }
 0xf27   :  { %v1539_v12 = vpop.eup %1538 }
 0xf28   :  { %610 = vrot.lane.b32.xlu2 %v1539_v12, %s1608_s11 }
 0xf46   :  { %v866_v6 = vpop.permute.xlu1 %865 }
 0xf47   :  { %v868_v16 = vadd.f32 %v866_v6, %v858_v14 }
 0xf49   :  { %1540 = vtanh.f32 %v868_v16 }
 0xf4f   :  { %v1541_v17 = vpop.eup %1540 }
 0xf50   :  { %871 = vrot.lane.b32.xlu0 %v1541_v17, %s1608_s11 }
 0xf82   :  { %v611_v18 = vpop.permute.xlu2 %610 }
 0xf83   :  { %v613_v21 = vmul.f32 %v611_v18, %v594_v58 }
 0xf85   :  { %v1821_v22 = vpack.c.bf16 %v613_v21, %v613_v21 }
 0xf87   :  { %v623_v5 = vunpack.c.l.b16 %v1821_v22 }
 0xf89   :  { %v624_v23 = vpack.c.b16 %v623_v5, %v623_v5 }
 0xf8b   :  { %625 = vrot.lane.b32.xlu1 %v624_v23, %s1609_s12 }
 0xfc2   :  { %v872_v24 = vpop.permute.xlu0 %871 }
 0xfc3   :  { %v1825_v25 = vmul.f32 %v872_v24, %v851_v3 }
 0xfc5   :  { %v881_v26 = vpack.c.bf16 %v1825_v25, %v1825_v25 }
 0xfc7   :  { %883 = vrot.lane.b32.xlu2 %v881_v26, %s1609_s12 }
 0xffd   :  { %v626_v27 = vpop.permute.xlu1 %625 }
 0xffe   :  { %1395 = vmatmul.msk.bf16.vlgmr.msra.gmra.mxu2 %vm31_vm0, %v626_v27 }
 0xfff   :  { %1089 = vmatpush.bf16.msra.mxu2 %v1782_v19 }
0x1003   :  { %1090 = vmatpush.bf16.msra.mxu2 %v1788_v20 }
0x1021   :  { %v884_v28 = vpop.permute.xlu2 %883 }
0x1022   :  { %1435 = vmatmul.msk.bf16.vlgmr.msrb.gmra.mxu2 %vm31_vm0, %v884_v28 }
0x1023   :  { %1284 = vmatpush.bf16.msrb.mxu2 %v1782_v19 }
0x1027   :  { %1285 = vmatpush.bf16.msrb.mxu2 %v1788_v20 }
0x1081   :  { %v1836_v29 = vpop.f32.mrf.mxu2 }
0x1089   :  { %v641_v31 = vpop.f32.mrf.mxu2 }
0x10a5   :  { %v897_v34 = vpop.f32.mrf.mxu2 }
0x10a6   :  { %v901_v35 = vadd.f32 %v897_v34, %v774_v33 }
0x10a8   :  { %1542 = vtanh.f32 %v901_v35  ;;  %v1436_v37 = vmul.f32 -1.442695, %v901_v35 }
0x10aa   :  { %1544 = vpow2.f32 %v1436_v37 }
0x10ad   :  { %v899_v8 = vpop.f32.mrf.mxu2 }
0x10ae   :  { %v1543_v36 = vpop.eup %1542 }
0x10af   :  { %924 = vrot.lane.b32.xlu0 %v1543_v36, %s1608_s11 }
0x10b0   :  { %v1545_v19 = vpop.eup %1544 }
0x10b1   :  { %v905_v20 = vadd.f32 1.0, %v1545_v19 }
0x10b3   :  { %1546 = vrcp.f32 %v905_v20  ;;  %v917_v46 = vand.u32 2147483648, %v905_v20  ;;  %vm911_vm5 = vweird.f32 %v905_v20  ;;  %v915_v47 = vand.u32 2147483647, %v905_v20 }
0x10b5   :  { %v918_v49 = vor.u32 1.1754944e-38, %v917_v46  ;;  %vm916_vm7 = vcmp.eq.f32.partialorder %v915_v47, 8.507059e+37 }
0x10b7   :  { %348 = vrot.lane.b32.xlu0 %v1724_v39, %s1609_s12 }
0x10b9   :  { %v1547_v40 = vpop.eup %1546 }
0x10ba   :  { %v907_v41 = vmul.f32 %v1547_v40, %v905_v20  ;;  %vm912_vm4 = vweird.f32 %v1547_v40 }
0x10bb   :  { %vm913_vm6 = vmor %vm911_vm5, %vm912_vm4 }
0x10bc   :  { %v908_v43 = vsub.f32 1.0, %v907_v41 }
0x10be   :  { %v909_v44 = vmul.f32 %v1547_v40, %v908_v43 }
0x10c0   :  { %v910_v45 = vadd.f32 %v1547_v40, %v909_v44 }
0x10c2   :  { %v914_v48 = vsel %vm913_vm6, %v1547_v40, %v910_v45 }
0x10c3   :  { %v919_v39 = vsel %vm916_vm7, %v918_v49, %v914_v48 }
0x10c4   :  { %v922_v53 = vmul.f32 %v919_v39, %v868_v16 }
0x1121   :  { %v925_v50 = vpop.permute.xlu0 %924 }
0x1122   :  { %v927_v51 = vmul.f32 %v925_v50, %v919_v39 }
0x1124   :  { %929 = vrot.lane.b32.xlu1 %v927_v51, %s1608_s11 }
0x1129   :  { %v349_v52 = vpop.permute.xlu0 %348 }
0x112a   :  { %352 = vst.msk [vmem:[#allocation3 + $0x8] sm:$0xf] %vm217_vm10, %v349_v52 }
0x112c   :  { %415 = vrot.lane.b32.xlu1 %v1737_v9, %s1609_s12 }
0x1196   :  { %v930_v54 = vpop.permute.xlu1 %929 }
0x1197   :  { %v932_v55 = vadd.f32 %v930_v54, %v922_v53 }
0x1199   :  { %1548 = vtanh.f32 %v932_v55 }
0x119e   :  { %v416_v56 = vpop.permute.xlu1 %415 }
0x119f   :  { %v1549_v57 = vpop.eup %1548  ;;  %419 = vst.msk [vmem:[#allocation3 + $0xc] sm:$0xf] %vm217_vm10, %v416_v56 }
0x11a0   :  { %935 = vrot.lane.b32.xlu2 %v1549_v57, %s1608_s11 }
0x11a6   :  { %v1469_v58 = vld [vmem:[#allocation3 + $0x8] sm:$0xff] }
0x11a7   :  { %1422 = vmatmul.msk.bf16.gmra.mxu3 %vm31_vm0, %v1469_v58 }
0x11fa   :  { %v936_v59 = vpop.permute.xlu2 %935 }
0x11fb   :  { %v1849_v60 = vmul.f32 %v936_v59, %v919_v39 }
0x11fd   :  { %v946_v61 = vpack.c.bf16 %v1849_v60, %v1849_v60 }
0x11ff   :  { %948 = vrot.lane.b32.xlu2 %v946_v61, %s1609_s12 }
0x122a   :  { %v776_v63 = vpop.f32.mrf.mxu3 }
0x122b   :  { %v777_v0 = vadd.f32 %v1808_v30, %v776_v63 }
0x1232   :  { %v778_v36 = vpop.f32.mrf.mxu3 }
0x1233   :  { %v779_v37 = vadd.f32 %v1808_v30, %v778_v36 }
0x1259   :  { %v949_v9 = vpop.permute.xlu2 %948 }
0x125a   :  { %1438 = vmatmul.msk.bf16.vlgmr.msrb.gmra.mxu0 %vm31_vm0, %v949_v9 }
0x12d7   :  { %v962_v1 = vpop.f32.mrf.mxu0 }
0x12d8   :  { %v966_v2 = vadd.f32 %v962_v1, %v777_v0 }
0x12da   :  { %1550 = vtanh.f32 %v966_v2  ;;  %v1439_v7 = vmul.f32 -1.442695, %v966_v2 }
0x12dc   :  { %1552 = vpow2.f32 %v1439_v7 }
0x12df   :  { %v964_v3 = vpop.f32.mrf.mxu0 }
0x12e0   :  { %v1551_v4 = vpop.eup %1550 }
0x12e1   :  { %989 = vrot.lane.b32.xlu0 %v1551_v4, %s1608_s11 }
0x12e2   :  { %v1553_v10 = vpop.eup %1552 }
0x12e3   :  { %v970_v38 = vadd.f32 1.0, %v1553_v10 }
0x12e5   :  { %1554 = vrcp.f32 %v970_v38  ;;  %v982_v17 = vand.u32 2147483648, %v970_v38  ;;  %vm976_vm9 = vweird.f32 %v970_v38  ;;  %v980_v18 = vand.u32 2147483647, %v970_v38 }
0x12e7   :  { %v983_v5 = vor.u32 1.1754944e-38, %v982_v17  ;;  %vm981_vm12 = vcmp.eq.f32.partialorder %v980_v18, 8.507059e+37 }
0x12eb   :  { %v1555_v12 = vpop.eup %1554 }
0x12ec   :  { %v972_v13 = vmul.f32 %v1555_v12, %v970_v38  ;;  %vm977_vm8 = vweird.f32 %v1555_v12 }
0x12ed   :  { %vm978_vm11 = vmor %vm976_vm9, %vm977_vm8 }
0x12ee   :  { %v973_v14 = vsub.f32 1.0, %v972_v13 }
0x12f0   :  { %v974_v6 = vmul.f32 %v1555_v12, %v973_v14 }
0x12f2   :  { %v975_v16 = vadd.f32 %v1555_v12, %v974_v6 }
0x12f4   :  { %v979_v21 = vsel %vm978_vm11, %v1555_v12, %v975_v16 }
0x12f5   :  { %v984_v24 = vsel %vm981_vm12, %v983_v5, %v979_v21 }
0x12f6   :  { %v987_v27 = vmul.f32 %v984_v24, %v932_v55 }
0x1353   :  { %v990_v23 = vpop.permute.xlu0 %989 }
0x1354   :  { %v992_v26 = vmul.f32 %v990_v23, %v984_v24 }
0x1356   :  { %994 = vrot.lane.b32.xlu1 %v992_v26, %s1608_s11 }
0x13c8   :  { %v995_v28 = vpop.permute.xlu1 %994 }
0x13c9   :  { %v997_v31 = vadd.f32 %v995_v28, %v987_v27  ;;  %v1606_v27 = vld [vmem:[%s2000_s3] ss:$0 sm:$0xff]  ;;  %s1610_s3 = smov 96  }
0x13ca   :  { %v128_v28 = vadd.f32 %v1606_v27, %v1855_v62 }
0x13cb   :  { %1556 = vtanh.f32 %v997_v31 }
0x13d1   :  { %v1557_v32 = vpop.eup %1556 }
0x13d2   :  { %1000 = vrot.lane.b32.xlu2 %v1557_v32, %s1608_s11  ;;  %v643_v32 = vadd.f32 %v1836_v29, %v128_v28 }
0x142c   :  { %v1001_v33 = vpop.permute.xlu2 %1000 }
0x142d   :  { %v1861_v34 = vmul.f32 %v1001_v33, %v984_v24 }
0x142f   :  { %v1011_v35 = vpack.c.bf16 %v1861_v34, %v1861_v34 }
0x1431   :  { %1013 = vrot.lane.b32.xlu0 %v1011_v35, %s1609_s12 }
0x14a3   :  { %v1014_v8 = vpop.permute.xlu0 %1013 }
0x14a4   :  { %1441 = vmatmul.msk.bf16.vlgmr.msra.gmra.mxu1 %vm31_vm0, %v1014_v8 }
0x1521   :  { %v1027_v19 = vpop.f32.mrf.mxu1 }
0x1522   :  { %v1031_v20 = vadd.f32 %v1027_v19, %v779_v37 }
0x1524   :  { %1558 = vtanh.f32 %v1031_v20  ;;  %v1442_v43 = vmul.f32 -1.442695, %v1031_v20 }
0x1526   :  { %1560 = vpow2.f32 %v1442_v43 }
0x1529   :  { %v1029_v40 = vpop.f32.mrf.mxu1 }
0x152a   :  { %v1559_v41 = vpop.eup %1558  ;;  %v1396_v40 = vmul.f32 -1.442695, %v643_v32 }
0x152b   :  { %1054 = vrot.lane.b32.xlu1 %v1559_v41, %s1608_s11 }
0x152c   :  { %v1561_v44 = vpop.eup %1560 }
0x152d   :  { %v1035_v45 = vadd.f32 1.0, %v1561_v44 }
0x152f   :  { %1562 = vrcp.f32 %v1035_v45  ;;  %v1047_v39 = vand.u32 2147483648, %v1035_v45  ;;  %vm1041_vm14 = vweird.f32 %v1035_v45  ;;  %v1045_v51 = vand.u32 2147483647, %v1035_v45 }
0x1531   :  { %v1048_v53 = vor.u32 1.1754944e-38, %v1047_v39  ;;  %vm1046_vm1 = vcmp.eq.f32.partialorder %v1045_v51, 8.507059e+37 }
0x1533   :  { %482 = vrot.lane.b32.xlu1 %v1746_v42, %s1609_s12 }
0x1535   :  { %v1563_v46 = vpop.eup %1562 }
0x1536   :  { %v1037_v47 = vmul.f32 %v1563_v46, %v1035_v45  ;;  %vm1042_vm13 = vweird.f32 %v1563_v46 }
0x1537   :  { %vm1043_vm15 = vmor %vm1041_vm14, %vm1042_vm13 }
0x1538   :  { %v1038_v48 = vsub.f32 1.0, %v1037_v47 }
0x153a   :  { %v1039_v49 = vmul.f32 %v1563_v46, %v1038_v48 }
0x153c   :  { %v1040_v50 = vadd.f32 %v1563_v46, %v1039_v49 }
0x153e   :  { %v1044_v52 = vsel %vm1043_vm15, %v1563_v46, %v1040_v50 }
0x153f   :  { %v1049_v42 = vsel %vm1046_vm1, %v1048_v53, %v1044_v52 }
0x1540   :  { %v1052_v57 = vmul.f32 %v1049_v42, %v997_v31 }
0x159d   :  { %v1055_v54 = vpop.permute.xlu1 %1054 }
0x159e   :  { %v1057_v55 = vmul.f32 %v1055_v54, %v1049_v42 }
0x15a0   :  { %1059 = vrot.lane.b32.xlu2 %v1057_v55, %s1608_s11 }
0x15a5   :  { %v483_v56 = vpop.permute.xlu1 %482 }
0x15a6   :  { %486 = vst.msk [vmem:[#allocation3 + $0x10] sm:$0xf] %vm217_vm10, %v483_v56 }
0x15a8   :  { %549 = vrot.lane.b32.xlu2 %v1773_v15, %s1609_s12 }
0x15fa   :  { %v1060_v58 = vpop.permute.xlu2 %1059 }
0x15fb   :  { %v1062_v59 = vadd.f32 %v1060_v58, %v1052_v57 }
0x15fd   :  { %1564 = vtanh.f32 %v1062_v59 }
0x1602   :  { %v550_v61 = vpop.permute.xlu2 %549 }
0x1603   :  { %v1565_v9 = vpop.eup %1564  ;;  %553 = vst.msk [vmem:[#allocation3 + $0x14] sm:$0xf] %vm217_vm10, %v550_v61 }
0x1604   :  { %1065 = vrot.lane.b32.xlu0 %v1565_v9, %s1608_s11 }
0x160a   :  { %v1470_v63 = vld [vmem:[#allocation3 + $0x10] sm:$0xff] }
0x160b   :  { %1423 = vmatmul.msk.bf16.gmra.mxu3 %vm31_vm0, %v1470_v63 }
0x1676   :  { %v1066_v0 = vpop.permute.xlu0 %1065 }
0x1677   :  { %v1878_v1 = vmul.f32 %v1066_v0, %v1049_v42 }
0x1679   :  { %v1076_v2 = vpack.c.bf16 %v1878_v1, %v1878_v1 }
0x167b   :  { %1078 = vrot.lane.b32.xlu0 %v1076_v2, %s1609_s12 }
0x168e   :  { %v781_v3 = vpop.f32.mrf.mxu3 }
0x168f   :  { %v782_v4 = vadd.f32 %v1808_v30, %v781_v3 }
0x1696   :  { %v783_v57 = vpop.f32.mrf.mxu3 }
0x1697   :  { %v784_v58 = vadd.f32 %v1808_v30, %v783_v57 }
0x16ed   :  { %v1079_v15 = vpop.permute.xlu0 %1078 }
0x16ee   :  { %1444 = vmatmul.msk.bf16.vlgmr.msra.gmra.mxu2 %vm31_vm0, %v1079_v15 }
0x1771   :  { %v1092_v7 = vpop.f32.mrf.mxu2 }
0x1772   :  { %v1096_v10 = vadd.f32 %v1092_v7, %v782_v4 }
0x1774   :  { %1566 = vtanh.f32 %v1096_v10  ;;  %v1445_v13 = vmul.f32 -1.442695, %v1096_v10 }
0x1776   :  { %1568 = vpow2.f32 %v1445_v13 }
0x1779   :  { %v1094_v38 = vpop.f32.mrf.mxu2 }
0x177a   :  { %v1567_v12 = vpop.eup %1566 }
0x177b   :  { %1119 = vrot.lane.b32.xlu1 %v1567_v12, %s1608_s11 }
0x177c   :  { %v1569_v14 = vpop.eup %1568 }
0x177d   :  { %v1100_v6 = vadd.f32 1.0, %v1569_v14 }
0x177f   :  { %1570 = vrcp.f32 %v1100_v6  ;;  %v1112_v23 = vand.u32 2147483648, %v1100_v6  ;;  %vm1106_vm3 = vweird.f32 %v1100_v6  ;;  %v1110_v24 = vand.u32 2147483647, %v1100_v6 }
0x1780   :  { %1572 = vtanh.f32 %v643_v32 }
0x1781   :  { %v1113_v31 = vor.u32 1.1754944e-38, %v1112_v23  ;;  %vm1111_vm5 = vcmp.eq.f32.partialorder %v1110_v24, 8.507059e+37 }
0x1785   :  { %v1571_v16 = vpop.eup %1570 }
0x1786   :  { %v1102_v17 = vmul.f32 %v1571_v16, %v1100_v6  ;;  %vm1107_vm2 = vweird.f32 %v1571_v16  ;;  %v1573_v36 = vpop.eup %1572 }
0x1787   :  { %vm1108_vm4 = vmor %vm1106_vm3, %vm1107_vm2 }
0x1788   :  { %v1103_v18 = vsub.f32 1.0, %v1102_v17 }
0x178a   :  { %v1104_v21 = vmul.f32 %v1571_v16, %v1103_v18 }
0x178c   :  { %v1105_v5 = vadd.f32 %v1571_v16, %v1104_v21 }
0x178e   :  { %v1109_v26 = vsel %vm1108_vm4, %v1571_v16, %v1105_v5 }
0x178f   :  { %v1114_v35 = vsel %vm1111_vm5, %v1113_v31, %v1109_v26 }
0x1790   :  { %v1117_v37 = vmul.f32 %v1114_v35, %v1062_v59 }
0x17ed   :  { %v1120_v33 = vpop.permute.xlu1 %1119 }
0x17ee   :  { %v1122_v8 = vmul.f32 %v1120_v33, %v1114_v35 }
0x17f0   :  { %1124 = vrot.lane.b32.xlu2 %v1122_v8, %s1608_s11 }
0x17f8   :  { %666 = vrot.lane.b32.xlu2 %v1573_v36, %s1608_s11 }
0x184a   :  { %v1125_v19 = vpop.permute.xlu2 %1124 }
0x184b   :  { %v1893_v20 = vadd.f32 %v1125_v19, %v1117_v37 }
0x184d   :  { %1574 = vtanh.f32 %v1893_v20 }
0x184e   :  { %1576 = vpow2.f32 %v1396_v40 }
0x1852   :  { %v667_v54 = vpop.permute.xlu2 %666 }
0x1853   :  { %v1575_v62 = vpop.eup %1574 }
0x1854   :  { %1130 = vrot.lane.b32.xlu0 %v1575_v62, %s1608_s11  ;;  %v1577_v29 = vpop.eup %1576 }
0x1855   :  { %v647_v41 = vadd.f32 1.0, %v1577_v29 }
0x1857   :  { %1578 = vrcp.f32 %v647_v41  ;;  %v659_v39 = vand.u32 2147483648, %v647_v41  ;;  %vm653_vm7 = vweird.f32 %v647_v41  ;;  %v657_v51 = vand.u32 2147483647, %v647_v41 }
0x1859   :  { %v660_v53 = vor.u32 1.1754944e-38, %v659_v39  ;;  %vm658_vm9 = vcmp.eq.f32.partialorder %v657_v51, 8.507059e+37 }
0x185d   :  { %v1579_v43 = vpop.eup %1578 }
0x185e   :  { %v649_v44 = vmul.f32 %v1579_v43, %v647_v41  ;;  %vm654_vm6 = vweird.f32 %v1579_v43 }
0x185f   :  { %vm655_vm8 = vmor %vm653_vm7, %vm654_vm6 }
0x1860   :  { %v650_v45 = vsub.f32 1.0, %v649_v44 }
0x1862   :  { %v651_v46 = vmul.f32 %v1579_v43, %v650_v45 }
0x1864   :  { %v652_v49 = vadd.f32 %v1579_v43, %v651_v46 }
0x1866   :  { %v656_v52 = vsel %vm655_vm8, %v1579_v43, %v652_v49 }
0x1867   :  { %v661_v42 = vsel %vm658_vm9, %v660_v53, %v656_v52 }
0x1868   :  { %v669_v55 = vmul.f32 %v667_v54, %v661_v42  ;;  %v664_v63 = vmul.f32 %v661_v42, %v1816_v11 }
0x18c6   :  { %v1131_v47 = vpop.permute.xlu0 %1130 }
0x18c7   :  { %v1897_v48 = vmul.f32 %v1131_v47, %v1114_v35 }
0x18c9   :  { %v1141_v50 = vpack.c.bf16 %v1897_v48, %v1897_v48 }
0x18cb   :  { %1143 = vrot.lane.b32.xlu1 %v1141_v50, %s1609_s12 }
0x18d3   :  { %671 = vrot.lane.b32.xlu1 %v669_v55, %s1608_s11 }
0x193d   :  { %v1144_v56 = vpop.permute.xlu1 %1143 }
0x193e   :  { %1447 = vmatmul.msk.bf16.vlgmr.msra.gmra.mxu0 %vm31_vm0, %v1144_v56 }
0x1945   :  { %v672_v9 = vpop.permute.xlu1 %671 }
0x1946   :  { %v1906_v0 = vadd.f32 %v672_v9, %v664_v63 }
0x19bb   :  { %v1157_v59 = vpop.f32.mrf.mxu0 }
0x19bc   :  { %v1161_v61 = vadd.f32 %v1157_v59, %v784_v58 }
0x19be   :  { %1580 = vtanh.f32 %v1161_v61  ;;  %v1448_v4 = vmul.f32 -1.442695, %v1161_v61 }
0x19bf   :  { %1582 = vtanh.f32 %v1906_v0 }
0x19c0   :  { %1584 = vpow2.f32 %v1448_v4 }
0x19c3   :  { %v1159_v2 = vpop.f32.mrf.mxu0 }
0x19c4   :  { %v1581_v15 = vpop.eup %1580 }
0x19c5   :  { %1184 = vrot.lane.b32.xlu0 %v1581_v15, %s1608_s11  ;;  %v1583_v3 = vpop.eup %1582 }
0x19c6   :  { %v1585_v7 = vpop.eup %1584 }
0x19c7   :  { %v1165_v10 = vadd.f32 1.0, %v1585_v7 }
0x19c9   :  { %1586 = vrcp.f32 %v1165_v10  ;;  %v1177_v6 = vand.u32 2147483648, %v1165_v10  ;;  %vm1171_vm12 = vweird.f32 %v1165_v10  ;;  %v1175_v16 = vand.u32 2147483647, %v1165_v10 }
0x19cb   :  { %v1178_v18 = vor.u32 1.1754944e-38, %v1177_v6  ;;  %vm1176_vm14 = vcmp.eq.f32.partialorder %v1175_v16, 8.507059e+37 }
0x19cd   :  { %677 = vrot.lane.b32.xlu0 %v1583_v3, %s1608_s11 }
0x19cf   :  { %v1587_v38 = vpop.eup %1586 }
0x19d0   :  { %v1167_v12 = vmul.f32 %v1587_v38, %v1165_v10  ;;  %vm1172_vm11 = vweird.f32 %v1587_v38 }
0x19d1   :  { %vm1173_vm13 = vmor %vm1171_vm12, %vm1172_vm11 }
0x19d2   :  { %v1168_v13 = vsub.f32 1.0, %v1167_v12 }
0x19d4   :  { %v1169_v11 = vmul.f32 %v1587_v38, %v1168_v13 }
0x19d6   :  { %v1170_v14 = vadd.f32 %v1587_v38, %v1169_v11 }
0x19d8   :  { %v1174_v17 = vsel %vm1173_vm13, %v1587_v38, %v1170_v14 }
0x19d9   :  { %v1179_v5 = vsel %vm1176_vm14, %v1178_v18, %v1174_v17 }
0x19da   :  { %v1182_v28 = vmul.f32 %v1179_v5, %v1893_v20 }
0x1a37   :  { %v1185_v21 = vpop.permute.xlu0 %1184 }
0x1a38   :  { %v1187_v23 = vmul.f32 %v1185_v21, %v1179_v5 }
0x1a3a   :  { %1189 = vrot.lane.b32.xlu2 %v1187_v23, %s1608_s11 }
0x1a3f   :  { %v678_v24 = vpop.permute.xlu0 %677 }
0x1a40   :  { %v1912_v26 = vmul.f32 %v678_v24, %v661_v42 }
0x1a42   :  { %v681_v27 = vpack.c.bf16 %v1912_v26, %v1912_v26  ;;  %616 = vrot.lane.b32.xlu2 %v1821_v22, %s1609_s12 }
0x1a44   :  { %683 = vrot.lane.b32.xlu0 %v681_v27, %s1609_s12 }
0x1a94   :  { %v1190_v31 = vpop.permute.xlu2 %1189 }
0x1a95   :  { %v1192_v32 = vadd.f32 %v1190_v31, %v1182_v28 }
0x1a97   :  { %1588 = vtanh.f32 %v1192_v32 }
0x1a9c   :  { %v617_v33 = vpop.permute.xlu2 %616 }
0x1a9d   :  { %v1589_v35 = vpop.eup %1588  ;;  %620 = vst.msk [vmem:[#allocation3 + $0x18] sm:$0xf] %vm217_vm10, %v617_v33 }
0x1a9e   :  { %1195 = vrot.lane.b32.xlu1 %v1589_v35, %s1608_s11 }
0x1ab6   :  { %v684_v8 = vpop.permute.xlu0 %683 }
0x1ab7   :  { %687 = vst.msk [vmem:[#allocation3 + $0x1c] sm:$0xf] %vm217_vm10, %v684_v8 }
0x1abe   :  { %v1471_v36 = vld [vmem:[#allocation3 + $0x18] sm:$0xff] }
0x1abf   :  { %1424 = vmatmul.msk.bf16.gmra.mxu3 %vm31_vm0, %v1471_v36 }
0x1b10   :  { %v1196_v22 = vpop.permute.xlu1 %1195 }
0x1b11   :  { %v1924_v37 = vmul.f32 %v1196_v22, %v1179_v5 }
0x1b13   :  { %v1206_v19 = vpack.c.bf16 %v1924_v37, %v1924_v37 }
0x1b15   :  { %1208 = vrot.lane.b32.xlu1 %v1206_v19, %s1609_s12 }
0x1b42   :  { %v786_v62 = vpop.f32.mrf.mxu3 }
0x1b43   :  { %v787_v40 = vadd.f32 %v1808_v30, %v786_v62 }
0x1b4a   :  { %v788_v7 = vpop.f32.mrf.mxu3 }
0x1b4b   :  { %v789_v10 = vadd.f32 %v1808_v30, %v788_v7 }
0x1b87   :  { %v1209_v20 = vpop.permute.xlu1 %1208 }
0x1b88   :  { %1450 = vmatmul.msk.bf16.vlgmr.msrb.gmra.mxu1 %vm31_vm0, %v1209_v20 }
0x1c05   :  { %v1222_v29 = vpop.f32.mrf.mxu1 }
0x1c06   :  { %v1226_v41 = vadd.f32 %v1222_v29, %v787_v40 }
0x1c08   :  { %1590 = vtanh.f32 %v1226_v41  ;;  %v1451_v45 = vmul.f32 -1.442695, %v1226_v41 }
0x1c0a   :  { %1592 = vpow2.f32 %v1451_v45 }
0x1c0d   :  { %v1224_v43 = vpop.f32.mrf.mxu1 }
0x1c0e   :  { %v1591_v44 = vpop.eup %1590 }
0x1c0f   :  { %1249 = vrot.lane.b32.xlu2 %v1591_v44, %s1608_s11 }
0x1c10   :  { %v1593_v46 = vpop.eup %1592 }
0x1c11   :  { %v1230_v47 = vadd.f32 1.0, %v1593_v46 }
0x1c13   :  { %1594 = vrcp.f32 %v1230_v47  ;;  %v1242_v53 = vand.u32 2147483648, %v1230_v47  ;;  %vm1236_vm15 = vweird.f32 %v1230_v47  ;;  %v1240_v54 = vand.u32 2147483647, %v1230_v47 }
0x1c15   :  { %v1243_v55 = vor.u32 1.1754944e-38, %v1242_v53  ;;  %vm1241_vm2 = vcmp.eq.f32.partialorder %v1240_v54, 8.507059e+37 }
0x1c19   :  { %v1595_v49 = vpop.eup %1594 }
0x1c1a   :  { %v1232_v50 = vmul.f32 %v1595_v49, %v1230_v47  ;;  %vm1237_vm10 = vweird.f32 %v1595_v49 }
0x1c1b   :  { %vm1238_vm1 = vmor %vm1236_vm15, %vm1237_vm10 }
0x1c1c   :  { %v1233_v39 = vsub.f32 1.0, %v1232_v50 }
0x1c1e   :  { %v1234_v51 = vmul.f32 %v1595_v49, %v1233_v39 }
0x1c20   :  { %v1235_v52 = vadd.f32 %v1595_v49, %v1234_v51 }
0x1c22   :  { %v1239_v42 = vsel %vm1238_vm1, %v1595_v49, %v1235_v52 }
0x1c23   :  { %v1244_v57 = vsel %vm1241_vm2, %v1243_v55, %v1239_v42 }
0x1c24   :  { %v1247_v59 = vmul.f32 %v1244_v57, %v1192_v32 }
0x1c69   :  { %v1250_v56 = vpop.permute.xlu2 %1249 }
0x1c6a   :  { %v1252_v58 = vmul.f32 %v1250_v56, %v1244_v57 }
0x1c6c   :  { %1254 = vrot.lane.b32.xlu0 %v1252_v58, %s1608_s11 }
0x1cde   :  { %v1255_v61 = vpop.permute.xlu0 %1254 }
0x1cdf   :  { %v1257_v9 = vadd.f32 %v1255_v61, %v1247_v59 }
0x1ce1   :  { %1596 = vtanh.f32 %v1257_v9 }
0x1ce7   :  { %v1597_v63 = vpop.eup %1596 }
0x1ce8   :  { %1260 = vrot.lane.b32.xlu1 %v1597_v63, %s1608_s11 }
0x1d5a   :  { %v1261_v2 = vpop.permute.xlu1 %1260 }
0x1d5b   :  { %v1934_v15 = vmul.f32 %v1261_v2, %v1244_v57 }
0x1d5d   :  { %v1271_v3 = vpack.c.bf16 %v1934_v15, %v1934_v15 }
0x1d5f   :  { %1273 = vrot.lane.b32.xlu2 %v1271_v3, %s1609_s12 }
0x1db9   :  { %v1274_v4 = vpop.permute.xlu2 %1273 }
0x1dba   :  { %1453 = vmatmul.msk.bf16.vlgmr.msrb.gmra.mxu2 %vm31_vm0, %v1274_v4 }
0x1e3d   :  { %v1287_v38 = vpop.f32.mrf.mxu2 }
0x1e3e   :  { %v1291_v12 = vadd.f32 %v1287_v38, %v789_v10 }
0x1e40   :  { %1598 = vtanh.f32 %v1291_v12  ;;  %v1454_v14 = vmul.f32 -1.442695, %v1291_v12 }
0x1e42   :  { %1600 = vpow2.f32 %v1454_v14 }
0x1e45   :  { %v1289_v13 = vpop.f32.mrf.mxu2 }
0x1e46   :  { %v1599_v11 = vpop.eup %1598 }
0x1e47   :  { %1314 = vrot.lane.b32.xlu0 %v1599_v11, %s1608_s11 }
0x1e48   :  { %v1601_v6 = vpop.eup %1600 }
0x1e49   :  { %v1295_v30 = vadd.f32 1.0, %v1601_v6 }
0x1e4b   :  { %1602 = vrcp.f32 %v1295_v30  ;;  %v1307_v23 = vand.u32 2147483648, %v1295_v30  ;;  %vm1301_vm4 = vweird.f32 %v1295_v30  ;;  %v1305_v24 = vand.u32 2147483647, %v1295_v30 }
0x1e4d   :  { %vm1306_vm6 = vcmp.eq.f32.partialorder %v1305_v24, 8.507059e+37 }
0x1e4f   :  { %689 = vrot.lane.b32.xlu0 %v1912_v26, %s1609_s12 }
0x1e51   :  { %v1603_v16 = vpop.eup %1602 }
0x1e52   :  { %v1297_v17 = vmul.f32 %v1603_v16, %v1295_v30  ;;  %vm1302_vm3 = vweird.f32 %v1603_v16 }
0x1e53   :  { %vm1303_vm5 = vmor %vm1301_vm4, %vm1302_vm3 }
0x1e54   :  { %v1298_v18 = vsub.f32 1.0, %v1297_v17 }
0x1e56   :  { %v1299_v21 = vmul.f32 %v1603_v16, %v1298_v18 }
0x1e57   :  { %940 = vrot.lane.b32.xlu0 %v1849_v60, %s1609_s12  ;;  %v1308_v60 = vor.u32 1.1754944e-38, %v1307_v23 }
0x1e58   :  { %v1300_v5 = vadd.f32 %v1603_v16, %v1299_v21 }
0x1e5a   :  { %v1304_v26 = vsel %vm1303_vm5, %v1603_v16, %v1300_v5 }
0x1e5f   :  { %1135 = vrot.lane.b32.xlu0 %v1897_v48, %s1609_s12  ;;  %v1309_v48 = vsel %vm1306_vm6, %v1308_v60, %v1304_v26 }
0x1e60   :  { %v1312_v35 = vmul.f32 %v1309_v48, %v1257_v9 }
0x1eb9   :  { %v1315_v27 = vpop.permute.xlu0 %1314 }
0x1eba   :  { %v1317_v28 = vmul.f32 %v1315_v27, %v1309_v48 }
0x1ebc   :  { %1319 = vrot.lane.b32.xlu1 %v1317_v28, %s1608_s11 }
0x1ec1   :  { %v690_v31 = vpop.permute.xlu0 %689 }
0x1ec2   :  { %692 = vst.msk [vmem:[#allocation4] sm:$0xff] %vm31_vm0, %v690_v31 }
0x1ec4   :  { %694 = vrot.lane.b32.xlu1 %v1906_v0, %s1610_s3 }
0x1ec9   :  { %v941_v32 = vpop.permute.xlu0 %940 }
0x1eca   :  { %1437 = vst.msk [vmem:[%s2005_s7 + $0x8] sm:$0xff] %vm31_vm0, %v941_v32 }
0x1ecc   :  { %1005 = vrot.lane.b32.xlu1 %v1861_v34, %s1609_s12 }
0x1ed1   :  { %v1136_v33 = vpop.permute.xlu0 %1135 }
0x1ed2   :  { %1446 = vst.msk [vmem:[%s2005_s7 + $0x20] sm:$0xff] %vm31_vm0, %v1136_v33 }
0x1ed4   :  { %1200 = vrot.lane.b32.xlu1 %v1924_v37, %s1609_s12 }
0x1f2e   :  { %v1320_v0 = vpop.permute.xlu1 %1319 }
0x1f2f   :  { %v1322_v8 = vadd.f32 %v1320_v0, %v1312_v35 }
0x1f31   :  { %1604 = vtanh.f32 %v1322_v8  ;;  %1337 = vrot.lane.b32.xlu1 %v1322_v8, %s1610_s3 }
0x1f36   :  { %v695_v36 = vpop.permute.xlu1 %694 }
0x1f37   :  { %v1605_v22 = vpop.eup %1604  ;;  %697 = vst.msk [vmem:[#allocation5] sm:$0xff] %vm31_vm0, %v695_v36 }
0x1f38   :  { %1325 = vrot.lane.b32.xlu2 %v1605_v22, %s1608_s11 }
0x1f3e   :  { %v1006_v34 = vpop.permute.xlu1 %1005 }
0x1f3f   :  { %1440 = vst.msk [vmem:[%s2005_s7 + $0x10] sm:$0xff] %vm31_vm0, %v1006_v34 }
0x1f40   :  { %876 = vrot.lane.b32.xlu2 %v1825_v25, %s1609_s12 }
0x1f46   :  { %v1201_v37 = vpop.permute.xlu1 %1200 }
0x1f47   :  { %1449 = vst.msk [vmem:[%s2005_s7 + $0x28] sm:$0xff] %vm31_vm0, %v1201_v37 }
0x1f48   :  { %1070 = vrot.lane.b32.xlu2 %v1878_v1, %s1609_s12 }
0x1f50   :  { %1265 = vrot.lane.b32.xlu2 %v1934_v15, %s1609_s12 }
0x1f92   :  { %v1326_v19 = vpop.permute.xlu2 %1325 }
0x1f93   :  { %v1328_v20 = vmul.f32 %v1326_v19, %v1309_v48 }
0x1f95   :  { %1330 = vrot.lane.b32.xlu0 %v1328_v20, %s1609_s12 }
0x1f9a   :  { %v877_v62 = vpop.permute.xlu2 %876 }
0x1f9b   :  { %879 = vst.msk [vmem:[%s2005_s7] sm:$0xff] %vm31_vm0, %v877_v62 }
0x1fa2   :  { %v1071_v25 = vpop.permute.xlu2 %1070 }
0x1fa3   :  { %1443 = vst.msk [vmem:[%s2005_s7 + $0x18] sm:$0xff] %vm31_vm0, %v1071_v25  ;;  %v1338_v1 = vpop.permute.xlu1 %1337 }
0x1fa4   :  { %1340 = vst.msk [vmem:[#allocation5 + $0x8] sm:$0xff] %vm31_vm0, %v1338_v1 }
0x1faa   :  { %v1266_v40 = vpop.permute.xlu2 %1265 }
0x1fab   :  { %1452 = vst.msk [vmem:[%s2005_s7 + $0x30] sm:$0xff] %vm31_vm0, %v1266_v40 }
0x2007   :  { %v1331_v29 = vpop.permute.xlu0 %1330 }
0x2008   :  { %1455 = vst.msk [vmem:[%s2005_s7 + $0x38] sm:$0xff] %vm31_vm0, %v1331_v29 }
0x2009   :  { %1335 = vst.msk [vmem:[#allocation4 + $0x8] sm:$0xff] %vm31_vm0, %v1331_v29 }

</bundles_post_ra>
